<compile_context>
chip_gen: v5e
topology: v5e:2x2
jax: 0.10.0
libtpu: 0.0.40
codegen_flags: <defaults>
</compile_context>

<pallas_src>
import numpy as np
import jax
import jax.numpy as jnp
from jax.experimental import pallas as pl
from jax.experimental.pallas import tpu as pltpu


# --------------------- weight re-layout helpers (init-time) ---------------------

def _conv_row_mats(w_oihw, in_w, out_w):
    """Banded matrices M_i (i=0..KH-1) so that a valid conv in planar
    (H, W*Cin) layout is   out = sum_i  x[i:i+OH, :] @ M_i,
    with out in planar (OH, OW*Cout) layout.
    M_i[(ow+j)*Cin + ci, ow*Cout + co] = w[co, ci, i, j]."""
    cout, cin, kh, kw = w_oihw.shape
    m = jnp.zeros((kh, in_w * cin, out_w * cout), jnp.float32)
    ow = np.arange(out_w)
    ci = np.arange(cin)
    co = np.arange(cout)
    for i in range(kh):
        for j in range(kw):
            rows = (ow + j)[:, None, None] * cin + ci[None, :, None]
            cols = ow[:, None, None] * cout + co[None, None, :]
            rows = np.broadcast_to(rows, (out_w, cin, cout))
            cols = np.broadcast_to(cols, (out_w, cin, cout))
            vals = jnp.broadcast_to(
                jnp.transpose(w_oihw[:, :, i, j])[None, :, :],
                (out_w, cin, cout)).astype(jnp.float32)
            m = m.at[i, rows, cols].set(vals)
    return m


def _pool_row_mat(out_h):
    """(out_h, 2*out_h): averages adjacent row pairs (factor 0.5)."""
    m = np.zeros((out_h, 2 * out_h), np.float32)
    r = np.arange(out_h)
    m[r, 2 * r] = 0.5
    m[r, 2 * r + 1] = 0.5
    return jnp.asarray(m)


def _pool_col_mat(out_w, ch):
    """(2*out_w*ch, out_w*ch): averages adjacent column pairs per channel."""
    m = np.zeros((2 * out_w * ch, out_w * ch), np.float32)
    for p in range(out_w):
        for c in range(ch):
            m[(2 * p) * ch + c, p * ch + c] = 0.5
            m[(2 * p + 1) * ch + c, p * ch + c] = 0.5
    return jnp.asarray(m)


def prepare_params(p):
    """PyTorch-layout params -> kernel-layout constants (done once at init)."""
    fc1w = (p["fc1_w"].reshape(120, 16, 5, 5)   # [out, c, h, w]
            .transpose(2, 3, 1, 0)              # [h, w, c, out]  (HWC flatten)
            .reshape(5, 80, 120))               # per-h blocks, row = w*16 + c
    return {
        "m1": _conv_row_mats(p["w1"], in_w=32, out_w=28),     # (5, 32, 168)
        "b1": jnp.tile(p["b1"], 28).reshape(1, 168),
        "r1": _pool_row_mat(14),                              # (14, 28)
        "c1": _pool_col_mat(14, 6),                           # (168, 84)
        "m2": _conv_row_mats(p["w2"], in_w=14, out_w=10),     # (5, 84, 160)
        "b2": jnp.tile(p["b2"], 10).reshape(1, 160),
        "r2": _pool_row_mat(5),                               # (5, 10)
        "c2": _pool_col_mat(5, 16),                           # (160, 80)
        "fc1w": fc1w,                                         # (5, 80, 120)
        "fc1b": p["fc1_b"].reshape(1, 120),
        "fc2w": p["fc2_w"].T,                                 # (120, 84)
        "fc2b": p["fc2_b"].reshape(1, 84),
        "fc3w": p["fc3_w"].T,                                 # (84, 10)
        "fc3b": p["fc3_b"].reshape(1, 10),
    }


# ------------------------------ fused Pallas kernel ------------------------------

def _lenet_kernel(x_ref, m1_ref, b1_ref, r1_ref, c1_ref,
                  m2_ref, b2_ref, r2_ref, c2_ref,
                  fc1w_ref, fc1b_ref, fc2w_ref, fc2b_ref,
                  fc3w_ref, fc3b_ref, o_ref):
    f32 = jnp.float32

    # ---- conv1: 5x5, Cin=1, Cout=6 on the padded 32x32 plane -> (28, 28*6) ----
    x = x_ref[0]                                       # (32, 32)
    h1 = b1_ref[...]                                   # (1, 168), broadcasts
    for i in range(5):                                 # unrolled: 5 MXU matmuls
        h1 = h1 + jnp.dot(x[i:i + 28, :], m1_ref[i],
                          preferred_element_type=f32)  # (28, 168)

    # ---- 2x2 avg-pool (two constant matmuls) + sigmoid -> (14, 14*6) ----
    a1 = jax.nn.sigmoid(
        jnp.dot(jnp.dot(r1_ref[...], h1, preferred_element_type=f32),
                c1_ref[...], preferred_element_type=f32))          # (14, 84)

    # ---- conv2: 5x5, Cin=6, Cout=16 -> (10, 10*16) ----
    h2 = b2_ref[...]                                   # (1, 160)
    for i in range(5):
        h2 = h2 + jnp.dot(a1[i:i + 10, :], m2_ref[i],
                          preferred_element_type=f32)  # (10, 160)

    # ---- 2x2 avg-pool + sigmoid -> (5, 80), planar [h, w*16 + c] ----
    a2 = jax.nn.sigmoid(
        jnp.dot(jnp.dot(r2_ref[...], h2, preferred_element_type=f32),
                c2_ref[...], preferred_element_type=f32))          # (5, 80)

    # ---- fc1 + sigmoid (NCHW flatten folded into the weight layout) ----
    z = fc1b_ref[...]                                  # (1, 120)
    for h in range(5):
        z = z + jnp.dot(a2[h:h + 1, :], fc1w_ref[h],
                        preferred_element_type=f32)    # (1, 120)
    z = jax.nn.sigmoid(z)

    # ---- fc2 + sigmoid, fc3 + sigmoid ----
    z = jax.nn.sigmoid(
        jnp.dot(z, fc2w_ref[...], preferred_element_type=f32) + fc2b_ref[...])
    z = jax.nn.sigmoid(
        jnp.dot(z, fc3w_ref[...], preferred_element_type=f32) + fc3b_ref[...])
    o_ref[0] = z.astype(o_ref.dtype)                   # (1, 10)


def lenet_forward(x_nchw, kp):
    n, cin, hh, ww = x_nchw.shape
    assert (cin, hh, ww) == (1, 28, 28), x_nchw.shape
    # padding=2 for conv1 done once up front (tiny), Cin=1 channel squeezed.
    x = jnp.pad(x_nchw[:, 0, :, :], ((0, 0), (2, 2), (2, 2)))      # (N, 32, 32)

    const2d = lambda shape: pl.BlockSpec(shape, lambda b: (0, 0))
    const3d = lambda shape: pl.BlockSpec(shape, lambda b: (0, 0, 0))

    out = pl.pallas_call(
        _lenet_kernel,
        out_shape=jax.ShapeDtypeStruct((n, 1, 10), jnp.float32),
        grid=(n,),                                    # one sample per grid step
        in_specs=[
            pl.BlockSpec((1, 32, 32), lambda b: (b, 0, 0)),   # per-sample input
            const3d((5, 32, 168)),    # m1   (conv1 banded weights)
            const2d((1, 168)),        # b1
            const2d((14, 28)),        # r1   (pool1 row matrix)
            const2d((168, 84)),       # c1   (pool1 col matrix)
            const3d((5, 84, 160)),    # m2   (conv2 banded weights)
            const2d((1, 160)),        # b2
            const2d((5, 10)),         # r2
            const2d((160, 80)),       # c2
            const3d((5, 80, 120)),    # fc1w
            const2d((1, 120)),        # fc1b
            const2d((120, 84)),       # fc2w
            const2d((1, 84)),         # fc2b
            const2d((84, 10)),        # fc3w
            const2d((1, 10)),         # fc3b
        ],
        out_specs=pl.BlockSpec((1, 1, 10), lambda b: (b, 0, 0)),
        compiler_params=pltpu.CompilerParams(
            dimension_semantics=("parallel",)),       # v7x: split batch on 2 TCs
    )(x, kp["m1"], kp["b1"], kp["r1"], kp["c1"],
      kp["m2"], kp["b2"], kp["r2"], kp["c2"],
      kp["fc1w"], kp["fc1b"], kp["fc2w"], kp["fc2b"],
      kp["fc3w"], kp["fc3b"])
    return out.reshape(n, 10)


# ---------------------------- params + pure-JAX reference ----------------------------

def init_params(key):
    ks = jax.random.split(key, 10)
    s = 0.1
    return {
        "w1": jax.random.normal(ks[0], (6, 1, 5, 5), jnp.float32) * s,
        "b1": jax.random.normal(ks[1], (6,), jnp.float32) * s,
        "w2": jax.random.normal(ks[2], (16, 6, 5, 5), jnp.float32) * s,
        "b2": jax.random.normal(ks[3], (16,), jnp.float32) * s,
        "fc1_w": jax.random.normal(ks[4], (120, 400), jnp.float32) * s,
        "fc1_b": jax.random.normal(ks[5], (120,), jnp.float32) * s,
        "fc2_w": jax.random.normal(ks[6], (84, 120), jnp.float32) * s,
        "fc2_b": jax.random.normal(ks[7], (84,), jnp.float32) * s,
        "fc3_w": jax.random.normal(ks[8], (10, 84), jnp.float32) * s,
        "fc3_b": jax.random.normal(ks[9], (10,), jnp.float32) * s,
    }


def lenet_reference(x_nchw, p):
    hp = jax.lax.Precision.HIGHEST
    h = jax.lax.conv_general_dilated(
        x_nchw, p["w1"], window_strides=(1, 1), padding=((2, 2), (2, 2)),
        dimension_numbers=("NCHW", "OIHW", "NCHW"), precision=hp)
    h = h + p["b1"][None, :, None, None]
    h = jax.lax.reduce_window(h, 0.0, jax.lax.add,
                              (1, 1, 2, 2), (1, 1, 2, 2), "VALID") * 0.25
    h = jax.nn.sigmoid(h)
    h = jax.lax.conv_general_dilated(
        h, p["w2"], window_strides=(1, 1), padding="VALID",
        dimension_numbers=("NCHW", "OIHW", "NCHW"), precision=hp)
    h = h + p["b2"][None, :, None, None]
    h = jax.lax.reduce_window(h, 0.0, jax.lax.add,
                              (1, 1, 2, 2), (1, 1, 2, 2), "VALID") * 0.25
    h = jax.nn.sigmoid(h)
    h = h.reshape(h.shape[0], -1)
    h = jax.nn.sigmoid(jnp.dot(h, p["fc1_w"].T, precision=hp) + p["fc1_b"])
    h = jax.nn.sigmoid(jnp.dot(h, p["fc2_w"].T, precision=hp) + p["fc2_b"])
    h = jax.nn.sigmoid(jnp.dot(h, p["fc3_w"].T, precision=hp) + p["fc3_b"])
    return h


if __name__ == "__main__":
    key = jax.random.PRNGKey(0)
    k_x, k_p = jax.random.split(key)
    # LeNet's Linear(400, 120) pins the input to 1x28x28.
    x = jax.random.normal(k_x, (2, 1, 28, 28), jnp.float32)
    params = init_params(k_p)
    kparams = prepare_params(params)          # one-time weight re-layout

    out = jax.block_until_ready(jax.jit(lenet_forward)(x, kparams))
    assert out.shape == (2, 10), out.shape
    assert bool(jnp.all(jnp.isfinite(out)))

    ref = lenet_reference(x, params)
    max_err = float(jnp.max(jnp.abs(out - ref)))
    assert max_err < 2e-3, max_err
    print("KERNEL_OK")
</pallas_src>

<mosaic_0001>
module attributes {stable_mosaic.version = 11 : i64} {
  func.func @_lenet_kernel(%arg0: i32, %arg1: memref<1x32x32xf32, #tpu.memory_space<vmem>>, %arg2: memref<5x32x168xf32, #tpu.memory_space<vmem>>, %arg3: memref<1x168xf32, #tpu.memory_space<vmem>>, %arg4: memref<14x28xf32, #tpu.memory_space<vmem>>, %arg5: memref<168x84xf32, #tpu.memory_space<vmem>>, %arg6: memref<5x84x160xf32, #tpu.memory_space<vmem>>, %arg7: memref<1x160xf32, #tpu.memory_space<vmem>>, %arg8: memref<5x10xf32, #tpu.memory_space<vmem>>, %arg9: memref<160x80xf32, #tpu.memory_space<vmem>>, %arg10: memref<5x80x120xf32, #tpu.memory_space<vmem>>, %arg11: memref<1x120xf32, #tpu.memory_space<vmem>>, %arg12: memref<120x84xf32, #tpu.memory_space<vmem>>, %arg13: memref<1x84xf32, #tpu.memory_space<vmem>>, %arg14: memref<84x10xf32, #tpu.memory_space<vmem>>, %arg15: memref<1x10xf32, #tpu.memory_space<vmem>>, %arg16: memref<1x1x10xf32, #tpu.memory_space<vmem>>) attributes {dimension_semantics = [#tpu.dimension_semantics<parallel>], iteration_bounds = array<i64: 2>, scalar_prefetch = 0 : i64, scratch_operands = 0 : i64, tpu.core_type = #tpu.core_type<tc>, window_params = [{transform_indices = @transform_0, window_bounds = array<i64: 1, 32, 32>}, {pipeline_mode = #tpu.pipeline_mode<synchronous>, transform_indices = @transform_1, window_bounds = array<i64: 5, 32, 168>}, {pipeline_mode = #tpu.pipeline_mode<synchronous>, transform_indices = @transform_2, window_bounds = array<i64: 1, 168>}, {pipeline_mode = #tpu.pipeline_mode<synchronous>, transform_indices = @transform_3, window_bounds = array<i64: 14, 28>}, {pipeline_mode = #tpu.pipeline_mode<synchronous>, transform_indices = @transform_4, window_bounds = array<i64: 168, 84>}, {pipeline_mode = #tpu.pipeline_mode<synchronous>, transform_indices = @transform_5, window_bounds = array<i64: 5, 84, 160>}, {pipeline_mode = #tpu.pipeline_mode<synchronous>, transform_indices = @transform_6, window_bounds = array<i64: 1, 160>}, {pipeline_mode = #tpu.pipeline_mode<synchronous>, transform_indices = @transform_7, window_bounds = array<i64: 5, 10>}, {pipeline_mode = #tpu.pipeline_mode<synchronous>, transform_indices = @transform_8, window_bounds = array<i64: 160, 80>}, {pipeline_mode = #tpu.pipeline_mode<synchronous>, transform_indices = @transform_9, window_bounds = array<i64: 5, 80, 120>}, {pipeline_mode = #tpu.pipeline_mode<synchronous>, transform_indices = @transform_10, window_bounds = array<i64: 1, 120>}, {pipeline_mode = #tpu.pipeline_mode<synchronous>, transform_indices = @transform_11, window_bounds = array<i64: 120, 84>}, {pipeline_mode = #tpu.pipeline_mode<synchronous>, transform_indices = @transform_12, window_bounds = array<i64: 1, 84>}, {pipeline_mode = #tpu.pipeline_mode<synchronous>, transform_indices = @transform_13, window_bounds = array<i64: 84, 10>}, {pipeline_mode = #tpu.pipeline_mode<synchronous>, transform_indices = @transform_14, window_bounds = array<i64: 1, 10>}, {transform_indices = @transform_15, window_bounds = array<i64: 1, 1, 10>}]} {
    %c0 = arith.constant 0 : index
    %c0_0 = arith.constant 0 : index
    %c0_1 = arith.constant 0 : index
    %0 = vector.load %arg1[%c0, %c0_0, %c0_1] : memref<1x32x32xf32, #tpu.memory_space<vmem>>, vector<1x32x32xf32>
    %1 = vector.shape_cast %0 : vector<1x32x32xf32> to vector<32x32xf32>
    %c0_2 = arith.constant 0 : index
    %c0_3 = arith.constant 0 : index
    %2 = vector.load %arg3[%c0_2, %c0_3] : memref<1x168xf32, #tpu.memory_space<vmem>>, vector<1x168xf32>
    %3 = vector.extract_strided_slice %1 {offsets = [0, 0], sizes = [28, 32], strides = [1, 1]} : vector<32x32xf32> to vector<28x32xf32>
    %c0_4 = arith.constant 0 : index
    %c0_5 = arith.constant 0 : index
    %c0_6 = arith.constant 0 : index
    %4 = vector.load %arg2[%c0_4, %c0_5, %c0_6] : memref<5x32x168xf32, #tpu.memory_space<vmem>>, vector<1x32x168xf32>
    %5 = vector.shape_cast %4 : vector<1x32x168xf32> to vector<32x168xf32>
    %cst = arith.constant dense<0.000000e+00> : vector<28x168xf32>
    %6 = tpu.matmul %3, %5, %cst {dimension_numbers = #tpu.dot_dimension_numbers<[1], [0], [0], [1], [0, 0, 1, 1], [], []>} : vector<28x32xf32>, vector<32x168xf32>, vector<28x168xf32> -> vector<28x168xf32>
    %7 = vector.broadcast %2 : vector<1x168xf32> to vector<28x168xf32>
    %8 = arith.addf %7, %6 : vector<28x168xf32>
    %9 = vector.extract_strided_slice %1 {offsets = [1, 0], sizes = [28, 32], strides = [1, 1]} : vector<32x32xf32> to vector<28x32xf32>
    %c1 = arith.constant 1 : index
    %c0_7 = arith.constant 0 : index
    %c0_8 = arith.constant 0 : index
    %10 = vector.load %arg2[%c1, %c0_7, %c0_8] : memref<5x32x168xf32, #tpu.memory_space<vmem>>, vector<1x32x168xf32>
    %11 = vector.shape_cast %10 : vector<1x32x168xf32> to vector<32x168xf32>
    %cst_9 = arith.constant dense<0.000000e+00> : vector<28x168xf32>
    %12 = tpu.matmul %9, %11, %cst_9 {dimension_numbers = #tpu.dot_dimension_numbers<[1], [0], [0], [1], [0, 0, 1, 1], [], []>} : vector<28x32xf32>, vector<32x168xf32>, vector<28x168xf32> -> vector<28x168xf32>
    %13 = arith.addf %8, %12 : vector<28x168xf32>
    %14 = vector.extract_strided_slice %1 {offsets = [2, 0], sizes = [28, 32], strides = [1, 1]} : vector<32x32xf32> to vector<28x32xf32>
    %c2 = arith.constant 2 : index
    %c0_10 = arith.constant 0 : index
    %c0_11 = arith.constant 0 : index
    %15 = vector.load %arg2[%c2, %c0_10, %c0_11] : memref<5x32x168xf32, #tpu.memory_space<vmem>>, vector<1x32x168xf32>
    %16 = vector.shape_cast %15 : vector<1x32x168xf32> to vector<32x168xf32>
    %cst_12 = arith.constant dense<0.000000e+00> : vector<28x168xf32>
    %17 = tpu.matmul %14, %16, %cst_12 {dimension_numbers = #tpu.dot_dimension_numbers<[1], [0], [0], [1], [0, 0, 1, 1], [], []>} : vector<28x32xf32>, vector<32x168xf32>, vector<28x168xf32> -> vector<28x168xf32>
    %18 = arith.addf %13, %17 : vector<28x168xf32>
    %19 = vector.extract_strided_slice %1 {offsets = [3, 0], sizes = [28, 32], strides = [1, 1]} : vector<32x32xf32> to vector<28x32xf32>
    %c3 = arith.constant 3 : index
    %c0_13 = arith.constant 0 : index
    %c0_14 = arith.constant 0 : index
    %20 = vector.load %arg2[%c3, %c0_13, %c0_14] : memref<5x32x168xf32, #tpu.memory_space<vmem>>, vector<1x32x168xf32>
    %21 = vector.shape_cast %20 : vector<1x32x168xf32> to vector<32x168xf32>
    %cst_15 = arith.constant dense<0.000000e+00> : vector<28x168xf32>
    %22 = tpu.matmul %19, %21, %cst_15 {dimension_numbers = #tpu.dot_dimension_numbers<[1], [0], [0], [1], [0, 0, 1, 1], [], []>} : vector<28x32xf32>, vector<32x168xf32>, vector<28x168xf32> -> vector<28x168xf32>
    %23 = arith.addf %18, %22 : vector<28x168xf32>
    %24 = vector.extract_strided_slice %1 {offsets = [4, 0], sizes = [28, 32], strides = [1, 1]} : vector<32x32xf32> to vector<28x32xf32>
    %c4 = arith.constant 4 : index
    %c0_16 = arith.constant 0 : index
    %c0_17 = arith.constant 0 : index
    %25 = vector.load %arg2[%c4, %c0_16, %c0_17] : memref<5x32x168xf32, #tpu.memory_space<vmem>>, vector<1x32x168xf32>
    %26 = vector.shape_cast %25 : vector<1x32x168xf32> to vector<32x168xf32>
    %cst_18 = arith.constant dense<0.000000e+00> : vector<28x168xf32>
    %27 = tpu.matmul %24, %26, %cst_18 {dimension_numbers = #tpu.dot_dimension_numbers<[1], [0], [0], [1], [0, 0, 1, 1], [], []>} : vector<28x32xf32>, vector<32x168xf32>, vector<28x168xf32> -> vector<28x168xf32>
    %28 = arith.addf %23, %27 : vector<28x168xf32>
    %c0_19 = arith.constant 0 : index
    %c0_20 = arith.constant 0 : index
    %29 = vector.load %arg4[%c0_19, %c0_20] : memref<14x28xf32, #tpu.memory_space<vmem>>, vector<14x28xf32>
    %cst_21 = arith.constant dense<0.000000e+00> : vector<14x168xf32>
    %30 = tpu.matmul %29, %28, %cst_21 {dimension_numbers = #tpu.dot_dimension_numbers<[1], [0], [0], [1], [0, 0, 1, 1], [], []>} : vector<14x28xf32>, vector<28x168xf32>, vector<14x168xf32> -> vector<14x168xf32>
    %c0_22 = arith.constant 0 : index
    %c0_23 = arith.constant 0 : index
    %31 = vector.load %arg5[%c0_22, %c0_23] : memref<168x84xf32, #tpu.memory_space<vmem>>, vector<168x84xf32>
    %cst_24 = arith.constant dense<0.000000e+00> : vector<14x84xf32>
    %32 = tpu.matmul %30, %31, %cst_24 {dimension_numbers = #tpu.dot_dimension_numbers<[1], [0], [0], [1], [0, 0, 1, 1], [], []>} : vector<14x168xf32>, vector<168x84xf32>, vector<14x84xf32> -> vector<14x84xf32>
    %33 = arith.negf %32 : vector<14x84xf32>
    %34 = math.exp %33 : vector<14x84xf32>
    %cst_25 = arith.constant 1.000000e+00 : f32
    %35 = vector.broadcast %cst_25 : f32 to vector<14x84xf32>
    %36 = arith.addf %35, %34 : vector<14x84xf32>
    %37 = arith.divf %35, %36 : vector<14x84xf32>
    %c0_26 = arith.constant 0 : index
    %c0_27 = arith.constant 0 : index
    %38 = vector.load %arg7[%c0_26, %c0_27] : memref<1x160xf32, #tpu.memory_space<vmem>>, vector<1x160xf32>
    %39 = vector.extract_strided_slice %37 {offsets = [0, 0], sizes = [10, 84], strides = [1, 1]} : vector<14x84xf32> to vector<10x84xf32>
    %c0_28 = arith.constant 0 : index
    %c0_29 = arith.constant 0 : index
    %c0_30 = arith.constant 0 : index
    %40 = vector.load %arg6[%c0_28, %c0_29, %c0_30] : memref<5x84x160xf32, #tpu.memory_space<vmem>>, vector<1x84x160xf32>
    %41 = vector.shape_cast %40 : vector<1x84x160xf32> to vector<84x160xf32>
    %cst_31 = arith.constant dense<0.000000e+00> : vector<10x160xf32>
    %42 = tpu.matmul %39, %41, %cst_31 {dimension_numbers = #tpu.dot_dimension_numbers<[1], [0], [0], [1], [0, 0, 1, 1], [], []>} : vector<10x84xf32>, vector<84x160xf32>, vector<10x160xf32> -> vector<10x160xf32>
    %43 = vector.broadcast %38 : vector<1x160xf32> to vector<10x160xf32>
    %44 = arith.addf %43, %42 : vector<10x160xf32>
    %45 = vector.extract_strided_slice %37 {offsets = [1, 0], sizes = [10, 84], strides = [1, 1]} : vector<14x84xf32> to vector<10x84xf32>
    %c1_32 = arith.constant 1 : index
    %c0_33 = arith.constant 0 : index
    %c0_34 = arith.constant 0 : index
    %46 = vector.load %arg6[%c1_32, %c0_33, %c0_34] : memref<5x84x160xf32, #tpu.memory_space<vmem>>, vector<1x84x160xf32>
    %47 = vector.shape_cast %46 : vector<1x84x160xf32> to vector<84x160xf32>
    %cst_35 = arith.constant dense<0.000000e+00> : vector<10x160xf32>
    %48 = tpu.matmul %45, %47, %cst_35 {dimension_numbers = #tpu.dot_dimension_numbers<[1], [0], [0], [1], [0, 0, 1, 1], [], []>} : vector<10x84xf32>, vector<84x160xf32>, vector<10x160xf32> -> vector<10x160xf32>
    %49 = arith.addf %44, %48 : vector<10x160xf32>
    %50 = vector.extract_strided_slice %37 {offsets = [2, 0], sizes = [10, 84], strides = [1, 1]} : vector<14x84xf32> to vector<10x84xf32>
    %c2_36 = arith.constant 2 : index
    %c0_37 = arith.constant 0 : index
    %c0_38 = arith.constant 0 : index
    %51 = vector.load %arg6[%c2_36, %c0_37, %c0_38] : memref<5x84x160xf32, #tpu.memory_space<vmem>>, vector<1x84x160xf32>
    %52 = vector.shape_cast %51 : vector<1x84x160xf32> to vector<84x160xf32>
    %cst_39 = arith.constant dense<0.000000e+00> : vector<10x160xf32>
    %53 = tpu.matmul %50, %52, %cst_39 {dimension_numbers = #tpu.dot_dimension_numbers<[1], [0], [0], [1], [0, 0, 1, 1], [], []>} : vector<10x84xf32>, vector<84x160xf32>, vector<10x160xf32> -> vector<10x160xf32>
    %54 = arith.addf %49, %53 : vector<10x160xf32>
    %55 = vector.extract_strided_slice %37 {offsets = [3, 0], sizes = [10, 84], strides = [1, 1]} : vector<14x84xf32> to vector<10x84xf32>
    %c3_40 = arith.constant 3 : index
    %c0_41 = arith.constant 0 : index
    %c0_42 = arith.constant 0 : index
    %56 = vector.load %arg6[%c3_40, %c0_41, %c0_42] : memref<5x84x160xf32, #tpu.memory_space<vmem>>, vector<1x84x160xf32>
    %57 = vector.shape_cast %56 : vector<1x84x160xf32> to vector<84x160xf32>
    %cst_43 = arith.constant dense<0.000000e+00> : vector<10x160xf32>
    %58 = tpu.matmul %55, %57, %cst_43 {dimension_numbers = #tpu.dot_dimension_numbers<[1], [0], [0], [1], [0, 0, 1, 1], [], []>} : vector<10x84xf32>, vector<84x160xf32>, vector<10x160xf32> -> vector<10x160xf32>
    %59 = arith.addf %54, %58 : vector<10x160xf32>
    %60 = vector.extract_strided_slice %37 {offsets = [4, 0], sizes = [10, 84], strides = [1, 1]} : vector<14x84xf32> to vector<10x84xf32>
    %c4_44 = arith.constant 4 : index
    %c0_45 = arith.constant 0 : index
    %c0_46 = arith.constant 0 : index
    %61 = vector.load %arg6[%c4_44, %c0_45, %c0_46] : memref<5x84x160xf32, #tpu.memory_space<vmem>>, vector<1x84x160xf32>
    %62 = vector.shape_cast %61 : vector<1x84x160xf32> to vector<84x160xf32>
    %cst_47 = arith.constant dense<0.000000e+00> : vector<10x160xf32>
    %63 = tpu.matmul %60, %62, %cst_47 {dimension_numbers = #tpu.dot_dimension_numbers<[1], [0], [0], [1], [0, 0, 1, 1], [], []>} : vector<10x84xf32>, vector<84x160xf32>, vector<10x160xf32> -> vector<10x160xf32>
    %64 = arith.addf %59, %63 : vector<10x160xf32>
    %c0_48 = arith.constant 0 : index
    %c0_49 = arith.constant 0 : index
    %65 = vector.load %arg8[%c0_48, %c0_49] : memref<5x10xf32, #tpu.memory_space<vmem>>, vector<5x10xf32>
    %cst_50 = arith.constant dense<0.000000e+00> : vector<5x160xf32>
    %66 = tpu.matmul %65, %64, %cst_50 {dimension_numbers = #tpu.dot_dimension_numbers<[1], [0], [0], [1], [0, 0, 1, 1], [], []>} : vector<5x10xf32>, vector<10x160xf32>, vector<5x160xf32> -> vector<5x160xf32>
    %c0_51 = arith.constant 0 : index
    %c0_52 = arith.constant 0 : index
    %67 = vector.load %arg9[%c0_51, %c0_52] : memref<160x80xf32, #tpu.memory_space<vmem>>, vector<160x80xf32>
    %cst_53 = arith.constant dense<0.000000e+00> : vector<5x80xf32>
    %68 = tpu.matmul %66, %67, %cst_53 {dimension_numbers = #tpu.dot_dimension_numbers<[1], [0], [0], [1], [0, 0, 1, 1], [], []>} : vector<5x160xf32>, vector<160x80xf32>, vector<5x80xf32> -> vector<5x80xf32>
    %69 = arith.negf %68 : vector<5x80xf32>
    %70 = math.exp %69 : vector<5x80xf32>
    %cst_54 = arith.constant 1.000000e+00 : f32
    %71 = vector.broadcast %cst_54 : f32 to vector<5x80xf32>
    %72 = arith.addf %71, %70 : vector<5x80xf32>
    %73 = arith.divf %71, %72 : vector<5x80xf32>
    %c0_55 = arith.constant 0 : index
    %c0_56 = arith.constant 0 : index
    %74 = vector.load %arg11[%c0_55, %c0_56] : memref<1x120xf32, #tpu.memory_space<vmem>>, vector<1x120xf32>
    %75 = vector.extract_strided_slice %73 {offsets = [0, 0], sizes = [1, 80], strides = [1, 1]} : vector<5x80xf32> to vector<1x80xf32>
    %c0_57 = arith.constant 0 : index
    %c0_58 = arith.constant 0 : index
    %c0_59 = arith.constant 0 : index
    %76 = vector.load %arg10[%c0_57, %c0_58, %c0_59] : memref<5x80x120xf32, #tpu.memory_space<vmem>>, vector<1x80x120xf32>
    %77 = vector.shape_cast %76 : vector<1x80x120xf32> to vector<80x120xf32>
    %cst_60 = arith.constant dense<0.000000e+00> : vector<1x120xf32>
    %78 = tpu.matmul %75, %77, %cst_60 {dimension_numbers = #tpu.dot_dimension_numbers<[1], [0], [0], [1], [0, 0, 1, 1], [], []>} : vector<1x80xf32>, vector<80x120xf32>, vector<1x120xf32> -> vector<1x120xf32>
    %79 = arith.addf %74, %78 : vector<1x120xf32>
    %80 = vector.extract_strided_slice %73 {offsets = [1, 0], sizes = [1, 80], strides = [1, 1]} : vector<5x80xf32> to vector<1x80xf32>
    %c1_61 = arith.constant 1 : index
    %c0_62 = arith.constant 0 : index
    %c0_63 = arith.constant 0 : index
    %81 = vector.load %arg10[%c1_61, %c0_62, %c0_63] : memref<5x80x120xf32, #tpu.memory_space<vmem>>, vector<1x80x120xf32>
    %82 = vector.shape_cast %81 : vector<1x80x120xf32> to vector<80x120xf32>
    %cst_64 = arith.constant dense<0.000000e+00> : vector<1x120xf32>
    %83 = tpu.matmul %80, %82, %cst_64 {dimension_numbers = #tpu.dot_dimension_numbers<[1], [0], [0], [1], [0, 0, 1, 1], [], []>} : vector<1x80xf32>, vector<80x120xf32>, vector<1x120xf32> -> vector<1x120xf32>
    %84 = arith.addf %79, %83 : vector<1x120xf32>
    %85 = vector.extract_strided_slice %73 {offsets = [2, 0], sizes = [1, 80], strides = [1, 1]} : vector<5x80xf32> to vector<1x80xf32>
    %c2_65 = arith.constant 2 : index
    %c0_66 = arith.constant 0 : index
    %c0_67 = arith.constant 0 : index
    %86 = vector.load %arg10[%c2_65, %c0_66, %c0_67] : memref<5x80x120xf32, #tpu.memory_space<vmem>>, vector<1x80x120xf32>
    %87 = vector.shape_cast %86 : vector<1x80x120xf32> to vector<80x120xf32>
    %cst_68 = arith.constant dense<0.000000e+00> : vector<1x120xf32>
    %88 = tpu.matmul %85, %87, %cst_68 {dimension_numbers = #tpu.dot_dimension_numbers<[1], [0], [0], [1], [0, 0, 1, 1], [], []>} : vector<1x80xf32>, vector<80x120xf32>, vector<1x120xf32> -> vector<1x120xf32>
    %89 = arith.addf %84, %88 : vector<1x120xf32>
    %90 = vector.extract_strided_slice %73 {offsets = [3, 0], sizes = [1, 80], strides = [1, 1]} : vector<5x80xf32> to vector<1x80xf32>
    %c3_69 = arith.constant 3 : index
    %c0_70 = arith.constant 0 : index
    %c0_71 = arith.constant 0 : index
    %91 = vector.load %arg10[%c3_69, %c0_70, %c0_71] : memref<5x80x120xf32, #tpu.memory_space<vmem>>, vector<1x80x120xf32>
    %92 = vector.shape_cast %91 : vector<1x80x120xf32> to vector<80x120xf32>
    %cst_72 = arith.constant dense<0.000000e+00> : vector<1x120xf32>
    %93 = tpu.matmul %90, %92, %cst_72 {dimension_numbers = #tpu.dot_dimension_numbers<[1], [0], [0], [1], [0, 0, 1, 1], [], []>} : vector<1x80xf32>, vector<80x120xf32>, vector<1x120xf32> -> vector<1x120xf32>
    %94 = arith.addf %89, %93 : vector<1x120xf32>
    %95 = vector.extract_strided_slice %73 {offsets = [4, 0], sizes = [1, 80], strides = [1, 1]} : vector<5x80xf32> to vector<1x80xf32>
    %c4_73 = arith.constant 4 : index
    %c0_74 = arith.constant 0 : index
    %c0_75 = arith.constant 0 : index
    %96 = vector.load %arg10[%c4_73, %c0_74, %c0_75] : memref<5x80x120xf32, #tpu.memory_space<vmem>>, vector<1x80x120xf32>
    %97 = vector.shape_cast %96 : vector<1x80x120xf32> to vector<80x120xf32>
    %cst_76 = arith.constant dense<0.000000e+00> : vector<1x120xf32>
    %98 = tpu.matmul %95, %97, %cst_76 {dimension_numbers = #tpu.dot_dimension_numbers<[1], [0], [0], [1], [0, 0, 1, 1], [], []>} : vector<1x80xf32>, vector<80x120xf32>, vector<1x120xf32> -> vector<1x120xf32>
    %99 = arith.addf %94, %98 : vector<1x120xf32>
    %100 = arith.negf %99 : vector<1x120xf32>
    %101 = math.exp %100 : vector<1x120xf32>
    %cst_77 = arith.constant 1.000000e+00 : f32
    %102 = vector.broadcast %cst_77 : f32 to vector<1x120xf32>
    %103 = arith.addf %102, %101 : vector<1x120xf32>
    %104 = arith.divf %102, %103 : vector<1x120xf32>
    %c0_78 = arith.constant 0 : index
    %c0_79 = arith.constant 0 : index
    %105 = vector.load %arg12[%c0_78, %c0_79] : memref<120x84xf32, #tpu.memory_space<vmem>>, vector<120x84xf32>
    %cst_80 = arith.constant dense<0.000000e+00> : vector<1x84xf32>
    %106 = tpu.matmul %104, %105, %cst_80 {dimension_numbers = #tpu.dot_dimension_numbers<[1], [0], [0], [1], [0, 0, 1, 1], [], []>} : vector<1x120xf32>, vector<120x84xf32>, vector<1x84xf32> -> vector<1x84xf32>
    %c0_81 = arith.constant 0 : index
    %c0_82 = arith.constant 0 : index
    %107 = vector.load %arg13[%c0_81, %c0_82] : memref<1x84xf32, #tpu.memory_space<vmem>>, vector<1x84xf32>
    %108 = arith.addf %106, %107 : vector<1x84xf32>
    %109 = arith.negf %108 : vector<1x84xf32>
    %110 = math.exp %109 : vector<1x84xf32>
    %cst_83 = arith.constant 1.000000e+00 : f32
    %111 = vector.broadcast %cst_83 : f32 to vector<1x84xf32>
    %112 = arith.addf %111, %110 : vector<1x84xf32>
    %113 = arith.divf %111, %112 : vector<1x84xf32>
    %c0_84 = arith.constant 0 : index
    %c0_85 = arith.constant 0 : index
    %114 = vector.load %arg14[%c0_84, %c0_85] : memref<84x10xf32, #tpu.memory_space<vmem>>, vector<84x10xf32>
    %cst_86 = arith.constant dense<0.000000e+00> : vector<1x10xf32>
    %115 = tpu.matmul %113, %114, %cst_86 {dimension_numbers = #tpu.dot_dimension_numbers<[1], [0], [0], [1], [0, 0, 1, 1], [], []>} : vector<1x84xf32>, vector<84x10xf32>, vector<1x10xf32> -> vector<1x10xf32>
    %c0_87 = arith.constant 0 : index
    %c0_88 = arith.constant 0 : index
    %116 = vector.load %arg15[%c0_87, %c0_88] : memref<1x10xf32, #tpu.memory_space<vmem>>, vector<1x10xf32>
    %117 = arith.addf %115, %116 : vector<1x10xf32>
    %118 = arith.negf %117 : vector<1x10xf32>
    %119 = math.exp %118 : vector<1x10xf32>
    %cst_89 = arith.constant 1.000000e+00 : f32
    %120 = vector.broadcast %cst_89 : f32 to vector<1x10xf32>
    %121 = arith.addf %120, %119 : vector<1x10xf32>
    %122 = arith.divf %120, %121 : vector<1x10xf32>
    %c0_90 = arith.constant 0 : index
    %c0_91 = arith.constant 0 : index
    %c0_92 = arith.constant 0 : index
    %123 = vector.load %arg16[%c0_90, %c0_91, %c0_92] : memref<1x1x10xf32, #tpu.memory_space<vmem>>, vector<1x1x10xf32>
    %124 = vector.shape_cast %123 : vector<1x1x10xf32> to vector<1x10xf32>
    %125 = vector.shape_cast %122 : vector<1x10xf32> to vector<1x1x10xf32>
    tpu.vector_store %arg16[%c0_90, %c0_91, %c0_92], %125 {strides = array<i32>} : memref<1x1x10xf32, #tpu.memory_space<vmem>>, vector<1x1x10xf32>,
    return
  }
  func.func @transform_0(%arg0: i32) -> (i32, i32, i32) {
    %c0_i32 = arith.constant 0 : i32
    %c0_i32_0 = arith.constant 0 : i32
    %c0_i32_1 = arith.constant 0 : i32
    return %arg0, %c0_i32, %c0_i32_0 : i32, i32, i32
  }
  func.func @transform_1(%arg0: i32) -> (i32, i32, i32) {
    %c0_i32 = arith.constant 0 : i32
    %c0_i32_0 = arith.constant 0 : i32
    %c0_i32_1 = arith.constant 0 : i32
    %c0_i32_2 = arith.constant 0 : i32
    return %c0_i32, %c0_i32_0, %c0_i32_1 : i32, i32, i32
  }
  func.func @transform_2(%arg0: i32) -> (i32, i32) {
    %c0_i32 = arith.constant 0 : i32
    %c0_i32_0 = arith.constant 0 : i32
    %c0_i32_1 = arith.constant 0 : i32
    return %c0_i32, %c0_i32_0 : i32, i32
  }
  func.func @transform_3(%arg0: i32) -> (i32, i32) {
    %c0_i32 = arith.constant 0 : i32
    %c0_i32_0 = arith.constant 0 : i32
    %c0_i32_1 = arith.constant 0 : i32
    return %c0_i32, %c0_i32_0 : i32, i32
  }
  func.func @transform_4(%arg0: i32) -> (i32, i32) {
    %c0_i32 = arith.constant 0 : i32
    %c0_i32_0 = arith.constant 0 : i32
    %c0_i32_1 = arith.constant 0 : i32
    return %c0_i32, %c0_i32_0 : i32, i32
  }
  func.func @transform_5(%arg0: i32) -> (i32, i32, i32) {
    %c0_i32 = arith.constant 0 : i32
    %c0_i32_0 = arith.constant 0 : i32
    %c0_i32_1 = arith.constant 0 : i32
    %c0_i32_2 = arith.constant 0 : i32
    return %c0_i32, %c0_i32_0, %c0_i32_1 : i32, i32, i32
  }
  func.func @transform_6(%arg0: i32) -> (i32, i32) {
    %c0_i32 = arith.constant 0 : i32
    %c0_i32_0 = arith.constant 0 : i32
    %c0_i32_1 = arith.constant 0 : i32
    return %c0_i32, %c0_i32_0 : i32, i32
  }
  func.func @transform_7(%arg0: i32) -> (i32, i32) {
    %c0_i32 = arith.constant 0 : i32
    %c0_i32_0 = arith.constant 0 : i32
    %c0_i32_1 = arith.constant 0 : i32
    return %c0_i32, %c0_i32_0 : i32, i32
  }
  func.func @transform_8(%arg0: i32) -> (i32, i32) {
    %c0_i32 = arith.constant 0 : i32
    %c0_i32_0 = arith.constant 0 : i32
    %c0_i32_1 = arith.constant 0 : i32
    return %c0_i32, %c0_i32_0 : i32, i32
  }
  func.func @transform_9(%arg0: i32) -> (i32, i32, i32) {
    %c0_i32 = arith.constant 0 : i32
    %c0_i32_0 = arith.constant 0 : i32
    %c0_i32_1 = arith.constant 0 : i32
    %c0_i32_2 = arith.constant 0 : i32
    return %c0_i32, %c0_i32_0, %c0_i32_1 : i32, i32, i32
  }
  func.func @transform_10(%arg0: i32) -> (i32, i32) {
    %c0_i32 = arith.constant 0 : i32
    %c0_i32_0 = arith.constant 0 : i32
    %c0_i32_1 = arith.constant 0 : i32
    return %c0_i32, %c0_i32_0 : i32, i32
  }
  func.func @transform_11(%arg0: i32) -> (i32, i32) {
    %c0_i32 = arith.constant 0 : i32
    %c0_i32_0 = arith.constant 0 : i32
    %c0_i32_1 = arith.constant 0 : i32
    return %c0_i32, %c0_i32_0 : i32, i32
  }
  func.func @transform_12(%arg0: i32) -> (i32, i32) {
    %c0_i32 = arith.constant 0 : i32
    %c0_i32_0 = arith.constant 0 : i32
    %c0_i32_1 = arith.constant 0 : i32
    return %c0_i32, %c0_i32_0 : i32, i32
  }
  func.func @transform_13(%arg0: i32) -> (i32, i32) {
    %c0_i32 = arith.constant 0 : i32
    %c0_i32_0 = arith.constant 0 : i32
    %c0_i32_1 = arith.constant 0 : i32
    return %c0_i32, %c0_i32_0 : i32, i32
  }
  func.func @transform_14(%arg0: i32) -> (i32, i32) {
    %c0_i32 = arith.constant 0 : i32
    %c0_i32_0 = arith.constant 0 : i32
    %c0_i32_1 = arith.constant 0 : i32
    return %c0_i32, %c0_i32_0 : i32, i32
  }
  func.func @transform_15(%arg0: i32) -> (i32, i32, i32) {
    %c0_i32 = arith.constant 0 : i32
    %c0_i32_0 = arith.constant 0 : i32
    %c0_i32_1 = arith.constant 0 : i32
    return %arg0, %c0_i32, %c0_i32_0 : i32, i32, i32
  }
}

</mosaic_0001>

<bundles_post_ra>
// kernel: lenet_forward.1
= control target key start
LH: loop header
LB: loop body
LE: loop exit
PB: predicated region body
PF: predicated region fallthrough
CT: control target
= control target key end

     0   :  { %s3634_s0 = inlined_call_operand.vmem [shape: f32[2,32,32], index: 0, kind: input, shape index: {}]   ;;  %s3635_s1 = inlined_call_operand.vmem [shape: f32[5,32,168], index: 1, kind: input, shape index: {}]   ;;  %s3636_s2 = inlined_call_operand.vmem [shape: f32[1,168], index: 2, kind: input, shape index: {}]   ;;  %s3637_s3 = inlined_call_operand.vmem [shape: f32[14,28], index: 3, kind: input, shape index: {}]   ;;  %s3638_s4 = inlined_call_operand.vmem [shape: f32[168,84], index: 4, kind: input, shape index: {}]   ;;  %s3639_s5 = inlined_call_operand.vmem [shape: f32[5,84,160], index: 5, kind: input, shape index: {}]   ;;  %s3640_s6 = inlined_call_operand.vmem [shape: f32[1,160], index: 6, kind: input, shape index: {}]   ;;  %s3641_s7 = inlined_call_operand.vmem [shape: f32[5,10], index: 7, kind: input, shape index: {}]   ;;  %s3642_s8 = inlined_call_operand.vmem [shape: f32[160,80], index: 8, kind: input, shape index: {}]   ;;  %s3643_s9 = inlined_call_operand.vmem [shape: f32[5,80,120], index: 9, kind: input, shape index: {}]   ;;  %s3644_s10 = inlined_call_operand.vmem [shape: f32[1,120], index: 10, kind: input, shape index: {}]   ;;  %s3645_s11 = inlined_call_operand.vmem [shape: f32[120,84], index: 11, kind: input, shape index: {}]   ;;  %s3646_s12 = inlined_call_operand.vmem [shape: f32[1,84], index: 12, kind: input, shape index: {}]   ;;  %s3647_s13 = inlined_call_operand.vmem [shape: f32[84,10], index: 13, kind: input, shape index: {}]   ;;  %s3648_s14 = inlined_call_operand.vmem [shape: f32[1,10], index: 14, kind: input, shape index: {}]   ;;  %s3649_s15 = inlined_call_operand.hbm [shape: f32[2,1,10], index: 15, kind: output, shape index: {}]  }
   0x1   :  { %3658 = sst [smem:[#allocation12_spill]] %s3634_s0 }
   0x2   :  { %20 = vsyncpa [#allocation3], 0 }
   0x3   :  { %22 = vsyncpa [#allocation3 + $0x1], 0  ;;  %s2553_s18 = smov 0   ;;  %s2555_s19 = smov 0  }
   0x4   :  { %s2557_s20 = smov 0   ;;  %s2559_s21 = smov 0  }
   0x5 LB: > { %3659 = sst [smem:[#allocation5_spill]] %s2459_s18  ;;  %s2574_s22 = sadd.s32 4294967295, %s2471_s21   ;;  %s2471_s21 = sphi %s2559_s21, %s3673_s21   ;;  %s2467_s20 = sphi %s2557_s20, %s3678_s20   ;;  %s2463_s19 = sphi %s2555_s19, %s3677_s19   ;;  %s2459_s18 = sphi %s2553_s18, %s3676_s18  }
   0x6   : > { %3660 = sst [smem:[#allocation6_spill]] %s2467_s20  ;;  %s2076_s23 = sadd.s32 4294967294, %s2471_s21  }
   0x7   : > { %3661 = sst [smem:[#allocation7_spill]] %s2471_s21  ;;  %s2578_s24 = sadd.s32 1, %s2471_s21  }
   0x8   : > { %3662 = sst [smem:[#allocation8_spill]] %s2578_s24  ;;  %s355_s25 = sadd.s32 1, %s2467_s20 }
   0x9   : > { %s352_s26 = ssub.s32 %s2471_s21, %s2578_s24  ;;  %p365_p0 = scmp.ne.s32.totalorder %s2467_s20, %s2463_s19 }
   0xa   : > { %p353_p1 = scmp.eq.s32.totalorder %s352_s26, 0  ;;  %p366_p2 = scmp.eq.s32.totalorder %s2574_s22, 1 }
   0xb   : > { %p371_p3 = scmp.ne.s32.totalorder %s2463_s19, %s2459_s18  ;;  %p372_p4 = scmp.eq.s32.totalorder %s2076_s23, 1 }
   0xc   : > { %s2589_s27 = scalar_select %p353_p1, %s2467_s20, %s355_s25  }
   0xd   : > { %p2591_p5 = por %p366_p2, %p365_p0  ;;  %p2595_p6 = por %p372_p4, %p371_p3 }
   0xe   : > { %3663 = sst [smem:[#allocation9_spill]] %s2589_s27  ;;  %p2079_p7 = scmp.ge.s32.totalorder %s2471_s21, 1 }
   0xf   : > { %s3664_s28 = scalar_select %p2591_p5, 1, 0 }
  0x10   : > { %s3666_s29 = scalar_select %p2595_p6, 1, 0 }
  0x11   : > { %3665 = sst [smem:[#allocation10_spill]] %s3664_s28  ;;  %p440_p8 = scmp.lt.s32.totalorder %s2471_s21, 3 }
  0x12   : > { %3667 = sst [smem:[#allocation11_spill]] %s3666_s29 }
  0x13   : > { %p441_p9 = pnand %p2079_p7, %p440_p8 }
  0x14   : > { %p487_p10 = scmp.lt.s32.totalorder (!%p441_p9), %s2574_s22, 1  ;;  %s3668_s0 = sld [smem:[#allocation12_spill]] (!%p441_p9) }
  0x15   : > { %444 = sbr.rel (%p441_p9) target bundleno = 1525 (0x5f5), region = 80  ;;  %s485_s21 = sand.u32 (!%p441_p9), 1, %s2463_s19  }
  0x16   : > { %s2017_s17 = scalar_lea.hbm (!%p441_p9), %s3649_s15, %s2574_s22  ;;  %s486_s23 = scalar_lea.vmem (!%p441_p9), [#allocation2], %s485_s21 }
  0x17   : > { %s2019_s25 = sshll.u32 (!%p441_p9), %s486_s23, 4  ;;  %s2021_s18 = sshll.u32 (!%p441_p9), %s2017_s17, 4  ;;  %s2020_s25 = int_to_ptr.vmem [resolvable:$true] %s2019_s25  ;;  %s2022_s18 = int_to_ptr.hbm [resolvable:$true] %s2021_s18 }
  0x18   : > { %s2423_s20 = sshra.s32 (!%p441_p9), %s2022_s18, 4  ;;  %s2429_s16 = scalar_lea.hbm (!%p441_p9), %s3649_s15, 2  ;;  %s2424_s20 = int_to_ptr.hbm [resolvable:$true] %s2423_s20 }
  0x19   : > { %s2425_s24 = scalar_lea.hbm (!%p441_p9), %s2424_s20, 1  ;;  %p2430_p0 = scmp.lt.s32.totalorder (!%p441_p9), %s2424_s20, %s3649_s15 }
  0x1a   : > { %v503_v0 = vld [vmem:[%s3635_s1 + $0x30] sm:$0xff]  ;;  %v504_v1 = vld [vmem:[%s3635_s1 + $0x38] sm:$0xff]  ;;  %v501_v2 = vld [vmem:[%s3635_s1 + $0x20] sm:$0xff]  ;;  %s488_s27 = scalar_select %p487_p10, %s2574_s22, 1  ;;  %vm505_vm0 = vcmask 261120   ;;  %vm598_vm1 = vcmask 1046528  }
  0x1b   : > { %530 = vmatpush.msra.mxu0 %v503_v0  ;;  %559 = vmatpush.msra.mxu1 %v504_v1  ;;  %v502_v3 = vld [vmem:[%s3635_s1 + $0x28] sm:$0xff]  ;;  %v2097_v4 = vld [vmem:[%s3635_s1 + $0x78] sm:$0xff]  ;;  %v499_v5 = vld [vmem:[%s3635_s1 + $0x10] sm:$0xff]  ;;  %vm780_vm2 = vcmask 1044480   ;;  %vm689_vm3 = vcmask 1045504   ;;  %vm871_vm4 = vcmask 1043456   ;;  %p2426_p11 = scmp.ne.s32.totalorder %s2424_s20, %s2425_s24  ;;  %p2431_p1 = scmp.lt.s32.totalorder %s2429_s16, %s2425_s24 }
  0x1c   : > { %655 = vmatpush.msra.mxu3 %v2097_v4  ;;  %v500_v6 = vld [vmem:[%s3635_s1 + $0x18] sm:$0xff]  ;;  %v2096_v7 = vld [vmem:[%s3635_s1 + $0x70] sm:$0xff]  ;;  %v2095_v8 = vld [vmem:[%s3635_s1 + $0x68] sm:$0xff]  ;;  %s2341_s26 = sshll.u32 %s488_s27, 5  ;;  %vm955_vm5 = vcmask 228352   ;;  %vm1035_vm6 = vcmask 326656  }
  0x1d   : > { %531 = vmatpush.msra.mxu0 %v501_v2  ;;  %560 = vmatpush.msra.mxu1 %v502_v3  ;;  %v2094_v9 = vld [vmem:[%s3635_s1 + $0x60] sm:$0xff]  ;;  %v498_v11 = vld [vmem:[%s3635_s1 + $0x8] sm:$0xff]  ;;  %v2093_v12 = vld [vmem:[%s3635_s1 + $0x58] sm:$0xff]  ;;  %s491_s30 = scalar_lea.vmem %s3668_s0, %s2341_s26  ;;  %vm1149_vm10 = vcmask 687104   ;;  %s2009_s22 = scalar_lea.sflag [#allocation3], %s485_s21 }
  0x1e   : > { %2342 = vmatpush.msra.mxu2 %v2096_v7  ;;  %656 = vmatpush.msra.mxu3 %v2095_v8  ;;  %v497_v10 = vld [vmem:[%s3635_s1] sm:$0xff]  ;;  %v2092_v13 = vld [vmem:[%s3635_s1 + $0x50] sm:$0xff]  ;;  %v2091_v14 = vld [vmem:[%s3635_s1 + $0x48] sm:$0xff]  ;;  %p2427_p12 = pnand %p2426_p11, %p2591_p5  ;;  %p2432_p2 = por %p2431_p1, %p2430_p0 }
  0x1f   : > { %532 = vmatpush.msra.mxu0 %v499_v5  ;;  %561 = vmatpush.msra.mxu1 %v500_v6  ;;  %v2651_v15 = vld [vmem:[%s491_s30] sm:$0xff]  ;;  %v2653_v16 = vld [vmem:[%s491_s30 + $0x8] sm:$0xff]  ;;  %v2655_v17 = vld [vmem:[%s491_s30 + $0x10] sm:$0xff] }
  0x20   : > { %2343 = vmatpush.msra.mxu2 %v2094_v9  ;;  %657 = vmatpush.msra.mxu3 %v2093_v12  ;;  %v599_v18 = vrot.slane %v2651_v15, 1  ;;  %v600_v19 = vrot.slane %v2653_v16, 1  ;;  %v602_v20 = vrot.slane %v2655_v17, 1  ;;  %v2090_v21 = vld [vmem:[%s3635_s1 + $0x40] sm:$0xff]  ;;  %v2112_v22 = vld [vmem:[%s3635_s1 + $0xb0] sm:$0xff]  ;;  %v2676_v25 = vld [vmem:[%s491_s30 + $0x18] sm:$0xff]  ;;  %p2428_p13 = pneg %p2427_p12 }
  0x21   : > { %533 = vmatpush.msra.mxu0 %v497_v10  ;;  %562 = vmatpush.msra.mxu1 %v498_v11  ;;  %v2128_v26 = vld [vmem:[%s3635_s1 + $0xf0] sm:$0xff]  ;;  %v2110_v27 = vld [vmem:[%s3635_s1 + $0xa0] sm:$0xff]  ;;  %v2129_v28 = vld [vmem:[%s3635_s1 + $0xf8] sm:$0xff]  ;;  %v604_v31 = vrot.slane %v2676_v25, 1  ;;  %v781_v43 = vrot.slane %v2651_v15, 3  ;;  %v782_v44 = vrot.slane %v2653_v16, 3 }
  0x22   : > { %2082 = vmatmul.msk.f32.vlgmr.msra.gmra.mxu0 %vm505_vm0, %v2651_v15  ;;  %2086 = vmatmul.msk.f32.vlgmr.msra.gmra.mxu1 %vm505_vm0, %v2651_v15  ;;  %v2671_v23 = vsel %vm598_vm1, %v599_v18, %v600_v19  ;;  %v603_v24 = vsel %vm598_vm1, %v600_v19, %v602_v20  ;;  %v2126_v29 = vld [vmem:[%s3635_s1 + $0xe0] sm:$0xff]  ;;  %v2108_v30 = vld [vmem:[%s3635_s1 + $0x90] sm:$0xff]  ;;  %v2127_v35 = vld [vmem:[%s3635_s1 + $0xe8] sm:$0xff]  ;;  %v690_v48 = vrot.slane %v2651_v15, 2  ;;  %v691_v49 = vrot.slane %v2653_v16, 2  ;;  %p2433_p3 = pnand %p2432_p2, %p2428_p13 }
  0x23   : > { %2344 = vmatpush.msra.mxu2 %v2092_v13  ;;  %658 = vmatpush.msra.mxu3 %v2091_v14  ;;  %v2124_v32 = vld [vmem:[%s3635_s1 + $0xd0] sm:$0xff]  ;;  %v2106_v33 = vld [vmem:[%s3635_s1 + $0x80] sm:$0xff]  ;;  %v605_v36 = vsel %vm598_vm1, %v602_v20, %v604_v31  ;;  %v2113_v37 = vld [vmem:[%s3635_s1 + $0xb8] sm:$0xff]  ;;  %v783_v47 = vsel %vm780_vm2, %v781_v43, %v782_v44  ;;  %v784_v53 = vrot.slane %v2655_v17, 3  ;;  %v693_v57 = vrot.slane %v2655_v17, 2 }
  0x24   : > { %2102 = vmatmul.msk.f32.vlgmr.msra.gmra.mxu3 %vm505_vm0, %v2671_v23  ;;  %626 = vmatpush.msrb.mxu1 %v2096_v7  ;;  %v2122_v34 = vld [vmem:[%s3635_s1 + $0xc0] sm:$0xff]  ;;  %v2125_v38 = vld [vmem:[%s3635_s1 + $0xd8] sm:$0xff]  ;;  %v2111_v39 = vld [vmem:[%s3635_s1 + $0xa8] sm:$0xff]  ;;  %v692_v52 = vsel %vm689_vm3, %v690_v48, %v691_v49  ;;  %v786_v61 = vrot.slane %v2676_v25, 3  ;;  %v875_v62 = vrot.slane %v2655_v17, 4  ;;  %v877_v63 = vrot.slane %v2676_v25, 4 }
  0x25   : > { %2345 = vmatpush.msra.mxu2 %v2090_v21  ;;  %717 = vmatpush.msrb.mxu0 %v2112_v22  ;;  %v2123_v40 = vld [vmem:[%s3635_s1 + $0xc8] sm:$0xff]  ;;  %v2109_v41 = vld [vmem:[%s3635_s1 + $0x98] sm:$0xff]  ;;  %v2144_v45 = vld [vmem:[%s3635_s1 + $0x130] sm:$0xff]  ;;  %v785_v56 = vsel %vm780_vm2, %v782_v44, %v784_v53  ;;  %v694_v60 = vsel %vm689_vm3, %v691_v49, %v693_v57  ;;  %v695_v1 = vrot.slane %v2676_v25, 2  ;;  %v872_v4 = vrot.slane %v2651_v15, 4 }
  0x26   : > { %2099 = vmatmul.msk.f32.vlgmr.msra.gmra.mxu2 %vm505_vm0, %v603_v24  ;;  %627 = vmatpush.msrb.mxu1 %v2094_v9  ;;  %v2107_v42 = vld [vmem:[%s3635_s1 + $0x88] sm:$0xff]  ;;  %v2142_v46 = vld [vmem:[%s3635_s1 + $0x120] sm:$0xff]  ;;  %v2140_v50 = vld [vmem:[%s3635_s1 + $0x110] sm:$0xff]  ;;  %v787_v0 = vsel %vm780_vm2, %v784_v53, %v786_v61  ;;  %v878_v2 = vsel %vm871_vm4, %v875_v62, %v877_v63  ;;  %v873_v5 = vrot.slane %v2653_v16, 4 }
  0x27   : > { %808 = vmatpush.msrb.mxu2 %v2128_v26  ;;  %718 = vmatpush.msrb.mxu0 %v2110_v27  ;;  %v2138_v51 = vld [vmem:[%s3635_s1 + $0x100] sm:$0xff]  ;;  %v2145_v54 = vld [vmem:[%s3635_s1 + $0x138] sm:$0xff]  ;;  %v2143_v55 = vld [vmem:[%s3635_s1 + $0x128] sm:$0xff]  ;;  %v696_v3 = vsel %vm689_vm3, %v693_v57, %v695_v1 }
  0x28   : > { %628 = vmatpush.msrb.mxu1 %v2092_v13  ;;  %837 = vmatpush.msrb.mxu3 %v2129_v28  ;;  %v2141_v58 = vld [vmem:[%s3635_s1 + $0x118] sm:$0xff]  ;;  %v2139_v59 = vld [vmem:[%s3635_s1 + $0x108] sm:$0xff]  ;;  %v874_v6 = vsel %vm871_vm4, %v872_v4, %v873_v5  ;;  %v876_v7 = vsel %vm871_vm4, %v873_v5, %v875_v62 }
  0x29   : > { %809 = vmatpush.msrb.mxu2 %v2126_v29  ;;  %719 = vmatpush.msrb.mxu0 %v2108_v30  ;;  %v1029_v49 = vld [vmem:[%s3638_s4 + $0x78] sm:$0xff] }
  0x2a   : > { %2083 = vmatmul.msk.f32.gmra.mxu0 %vm505_vm0, %v2653_v16  ;;  %2087 = vmatmul.msk.f32.gmra.mxu1 %vm505_vm0, %v2653_v16 }
  0x2b   : > { %810 = vmatpush.msrb.mxu2 %v2124_v32  ;;  %629 = vmatpush.msrb.mxu1 %v2090_v21 }
  0x2c   : > { %2103 = vmatmul.msk.f32.gmra.mxu3 %vm505_vm0, %v603_v24  ;;  %720 = vmatpush.msrb.mxu0 %v2106_v33 }
  0x2d   : > { %811 = vmatpush.msrb.mxu2 %v2122_v34  ;;  %838 = vmatpush.msrb.mxu3 %v2127_v35 }
  0x2e   : > { %2100 = vmatmul.msk.f32.gmra.mxu2 %vm505_vm0, %v605_v36  ;;  %746 = vmatpush.msra.mxu1 %v2113_v37 }
  0x2f   : > { %839 = vmatpush.msrb.mxu3 %v2125_v38  ;;  %899 = vmatpush.msra.mxu0 %v2144_v45 }
  0x30   : > { %747 = vmatpush.msra.mxu1 %v2111_v39  ;;  %v496_v39 = vld [vmem:[%s3636_s2] sm:$0x3] }
  0x31   : > { %840 = vmatpush.msrb.mxu3 %v2123_v40  ;;  %900 = vmatpush.msra.mxu0 %v2142_v46 }
  0x32   : > { %2084 = vmatmul.msk.f32.gmra.mxu0 %vm505_vm0, %v2655_v17  ;;  %2088 = vmatmul.msk.f32.gmra.mxu1 %vm505_vm0, %v2655_v17 }
  0x33   : > { %748 = vmatpush.msra.mxu1 %v2109_v41  ;;  %901 = vmatpush.msra.mxu0 %v2140_v50  ;;  %v577_v41 = vperm.slane %v496_v39, 0  ;;  %v1028_v50 = vld [vmem:[%s3638_s4 + $0x70] sm:$0xff] }
  0x34   : > { %2104 = vmatmul.msk.f32.gmra.mxu3 %vm505_vm0, %v605_v36 }
  0x35   : > { %749 = vmatpush.msra.mxu1 %v2107_v42  ;;  %902 = vmatpush.msra.mxu0 %v2138_v51 }
  0x36   : > { %2101 = vmatmul.msk.f32.gmra.mxu2 %vm505_vm0, %v604_v31 }
  0x3a   : > { %2085 = vmatmul.msk.f32.gmra.mxu0 %vm505_vm0, %v2676_v25  ;;  %2089 = vmatmul.msk.f32.gmra.mxu1 %vm505_vm0, %v2676_v25 }
  0x3c   : > { %2105 = vmatmul.msk.f32.gmra.mxu3 %vm505_vm0, %v604_v31 }
  0x3e   : > { %2130 = vmatmul.msk.f32.vlgmr.msrb.gmra.mxu2 %vm505_vm0, %v783_v47 }
  0x42   : > { %2098 = vmatmul.msk.f32.vlgmr.msrb.gmra.mxu1 %vm505_vm0, %v2671_v23  ;;  %2114 = vmatmul.msk.f32.vlgmr.msrb.gmra.mxu0 %vm505_vm0, %v692_v52 }
  0x43   : > { %928 = vmatpush.msrb.mxu1 %v2145_v54  ;;  %1042 = vmatpush.msrb.mxu0 %v1029_v49  ;;  %v1014_v49 = vld [vmem:[%s3638_s4] sm:$0xff] }
  0x44   : > { %2134 = vmatmul.msk.f32.vlgmr.msrb.gmra.mxu3 %vm505_vm0, %v783_v47 }
  0x45   : > { %929 = vmatpush.msrb.mxu1 %v2143_v55  ;;  %v1027_v55 = vld [vmem:[%s3638_s4 + $0x68] sm:$0xff]  ;;  %1043 = vmatpush.msrb.mxu0 %v1028_v50 }
  0x46   : > { %2131 = vmatmul.msk.f32.gmra.mxu2 %vm505_vm0, %v785_v56 }
  0x47   : > { %930 = vmatpush.msrb.mxu1 %v2141_v58  ;;  %1044 = vmatpush.msrb.mxu0 %v1027_v55  ;;  %v1148_v55 = vld [vmem:[%s3639_s5 + $0xa8] sm:$0xf] }
  0x49   : > { %931 = vmatpush.msrb.mxu1 %v2139_v59 }
  0x4a   : > { %2115 = vmatmul.msk.f32.gmra.mxu0 %vm505_vm0, %v694_v60  ;;  %2118 = vmatmul.msk.f32.vlgmr.msra.gmra.mxu1 %vm505_vm0, %v692_v52 }
  0x4b   : > { %2167 = vmatpush.msk.msra.mxu1 %vm871_vm4, %v1148_v55  ;;  %v2203_v55 = vld [vmem:[%s3639_s5 + $0x188] sm:$0xff] }
  0x4c   : > { %2135 = vmatmul.msk.f32.gmra.mxu3 %vm505_vm0, %v785_v56  ;;  %v578_v56 = vperm.slane %v496_v39, 1  ;;  %v1033_v39 = vld [vmem:[%s3638_s4 + $0x98] sm:$0xff] }
  0x4e   : > { %2132 = vmatmul.msk.f32.gmra.mxu2 %vm505_vm0, %v787_v0 }
  0x52   : > { %2116 = vmatmul.msk.f32.gmra.mxu0 %vm505_vm0, %v696_v3  ;;  %2119 = vmatmul.msk.f32.gmra.mxu1 %vm505_vm0, %v694_v60  ;;  %v1026_v60 = vld [vmem:[%s3638_s4 + $0x60] sm:$0xff] }
  0x53   : > { %1045 = vmatpush.msrb.mxu0 %v1026_v60  ;;  %v1141_v60 = vld [vmem:[%s3639_s5 + $0x70] sm:$0xff] }
  0x54   : > { %2136 = vmatmul.msk.f32.gmra.mxu3 %vm505_vm0, %v787_v0 }
  0x56   : > { %2133 = vmatmul.msk.f32.gmra.mxu2 %vm505_vm0, %v786_v61 }
  0x5a   : > { %2117 = vmatmul.msk.f32.gmra.mxu0 %vm505_vm0, %v695_v1  ;;  %2120 = vmatmul.msk.f32.gmra.mxu1 %vm505_vm0, %v696_v3  ;;  %v1025_v3 = vld [vmem:[%s3638_s4 + $0x58] sm:$0xff] }
  0x5b   : > { %1046 = vmatpush.msrb.mxu0 %v1025_v3  ;;  %v1136_v3 = vld [vmem:[%s3639_s5 + $0x48] sm:$0xff] }
  0x5c   : > { %2137 = vmatmul.msk.f32.gmra.mxu3 %vm505_vm0, %v786_v61 }
  0x62   : > { %2121 = vmatmul.msk.f32.gmra.mxu1 %vm505_vm0, %v695_v1  ;;  %2146 = vmatmul.msk.f32.vlgmr.msra.gmra.mxu0 %vm505_vm0, %v874_v6 }
  0x6a   : > { %2147 = vmatmul.msk.f32.gmra.mxu0 %vm505_vm0, %v876_v7  ;;  %2150 = vmatmul.msk.f32.vlgmr.msrb.gmra.mxu1 %vm505_vm0, %v874_v6 }
  0x72   : > { %2148 = vmatmul.msk.f32.gmra.mxu0 %vm505_vm0, %v878_v2  ;;  %2151 = vmatmul.msk.f32.gmra.mxu1 %vm505_vm0, %v876_v7 }
  0x7a   : > { %2149 = vmatmul.msk.f32.gmra.mxu0 %vm505_vm0, %v877_v63  ;;  %2152 = vmatmul.msk.f32.gmra.mxu1 %vm505_vm0, %v878_v2 }
  0x82   : > { %2153 = vmatmul.msk.f32.gmra.mxu1 %vm505_vm0, %v877_v63 }
  0x9f   : > { %v535_v8 = vpop.f32.mrf.mxu0  ;;  %v2814_v9 = vpop.f32.mrf.mxu1 }
  0xa0   : > { %v581_v51 = vadd.f32 %v577_v41, %v535_v8 }
  0xa7   : > { %v538_v10 = vpop.f32.mrf.mxu0  ;;  %v2816_v11 = vpop.f32.mrf.mxu1 }
  0xa8   : > { %v2818_v14 = vpop.f32.mrf.mxu3  ;;  %v583_v46 = vadd.f32 %v577_v41, %v538_v10  ;;  %v584_v8 = vadd.f32 %v578_v56, %v2816_v11  ;;  %v1023_v11 = vld [vmem:[%s3638_s4 + $0x48] sm:$0xff] }
  0xa9   : > { %v634_v15 = vpop.f32.mrf.mxu2 }
  0xaa   : > { %v674_v57 = vadd.f32 %v634_v15, %v583_v46  ;;  %v1030_v46 = vld [vmem:[%s3638_s4 + $0x80] sm:$0xff] }
  0xaf   : > { %v541_v12 = vpop.f32.mrf.mxu0  ;;  %v570_v13 = vpop.f32.mrf.mxu1 }
  0xb0   : > { %v2820_v20 = vpop.f32.mrf.mxu3  ;;  %v585_v43 = vadd.f32 %v577_v41, %v541_v12  ;;  %v586_v0 = vadd.f32 %v578_v56, %v570_v13  ;;  %v1024_v12 = vld [vmem:[%s3638_s4 + $0x50] sm:$0xff] }
  0xb1   : > { %v637_v21 = vpop.f32.mrf.mxu2  ;;  %1047 = vmatpush.msrb.mxu0 %v1024_v12  ;;  %v1129_v12 = vld [vmem:[%s3639_s5 + $0x10] sm:$0xff] }
  0xb2   : > { %v676_v52 = vadd.f32 %v637_v21, %v585_v43  ;;  %v1018_v43 = vld [vmem:[%s3638_s4 + $0x20] sm:$0xff] }
  0xb3   : > { %1048 = vmatpush.msrb.mxu0 %v1023_v11  ;;  %v2214_v11 = vld [vmem:[%s3639_s5 + $0x1e0] sm:$0xff] }
  0xb7   : > { %v544_v16 = vpop.f32.mrf.mxu0  ;;  %v573_v17 = vpop.f32.mrf.mxu1 }
  0xb8   : > { %v666_v24 = vpop.f32.mrf.mxu3  ;;  %v587_v42 = vadd.f32 %v577_v41, %v544_v16  ;;  %v588_v61 = vadd.f32 %v578_v56, %v573_v17  ;;  %v582_v17 = vadd.f32 %v578_v56, %v2814_v9  ;;  %v1145_v56 = vld [vmem:[%s3639_s5 + $0x90] sm:$0xff] }
  0xb9   : > { %v640_v25 = vpop.f32.mrf.mxu2  ;;  %v677_v10 = vadd.f32 %v666_v24, %v586_v0  ;;  %v1137_v0 = vld [vmem:[%s3639_s5 + $0x50] sm:$0xff] }
  0xba   : > { %v678_v47 = vadd.f32 %v640_v25, %v587_v42  ;;  %v673_v25 = vadd.f32 %v2818_v14, %v582_v17  ;;  %v953_v14 = vld [vmem:[%s3637_s3] sm:$0xff] }
  0xbb   : > { %v1127_v17 = vld [vmem:[%s3639_s5] sm:$0xff] }
  0xbf   : > { %v631_v18 = vpop.f32.mrf.mxu1  ;;  %v722_v19 = vpop.f32.mrf.mxu0 }
  0xc0   : > { %v669_v28 = vpop.f32.mrf.mxu3  ;;  %v672_v58 = vadd.f32 %v631_v18, %v581_v51  ;;  %v675_v18 = vadd.f32 %v2820_v20, %v584_v8  ;;  %v2190_v8 = vld [vmem:[%s3639_s5 + $0x150] sm:$0xf] }
  0xc1   : > { %v813_v29 = vpop.f32.mrf.mxu2  ;;  %v679_v4 = vadd.f32 %v669_v28, %v588_v61  ;;  %v1142_v61 = vld [vmem:[%s3639_s5 + $0x78] sm:$0xff] }
  0xc2   : > { %v763_v5 = vadd.f32 %v722_v19, %v672_v58  ;;  %v1143_v58 = vld [vmem:[%s3639_s5 + $0x80] sm:$0xff] }
  0xc4   : > { %v854_v21 = vadd.f32 %v813_v29, %v763_v5  ;;  %v1021_v29 = vld [vmem:[%s3638_s4 + $0x38] sm:$0xff] }
  0xc5   : > { %v1134_v5 = vld [vmem:[%s3639_s5 + $0x38] sm:$0xff] }
  0xc7   : > { %v725_v22 = vpop.f32.mrf.mxu0  ;;  %v2822_v23 = vpop.f32.mrf.mxu1 }
  0xc8   : > { %v2826_v32 = vpop.f32.mrf.mxu3  ;;  %v765_v62 = vadd.f32 %v725_v22, %v674_v57  ;;  %v1146_v57 = vld [vmem:[%s3639_s5 + $0x98] sm:$0xff] }
  0xc9   : > { %v816_v33 = vpop.f32.mrf.mxu2  ;;  %1191 = vmatpush.msra.mxu1 %v1146_v57  ;;  %v2274_v57 = vld [vmem:[%s3639_s5 + $0x360] sm:$0xf] }
  0xca   : > { %v856_v15 = vadd.f32 %v816_v33, %v765_v62  ;;  %v1139_v62 = vld [vmem:[%s3639_s5 + $0x60] sm:$0xff] }
  0xcf   : > { %v728_v26 = vpop.f32.mrf.mxu0  ;;  %v2824_v27 = vpop.f32.mrf.mxu1 }
  0xd0   : > { %v2828_v36 = vpop.f32.mrf.mxu3  ;;  %v767_v59 = vadd.f32 %v728_v26, %v676_v52  ;;  %v1022_v26 = vld [vmem:[%s3638_s4 + $0x40] sm:$0xff]  ;;  %v766_v9 = vadd.f32 %v2824_v27, %v675_v18  ;;  %v1128_v18 = vld [vmem:[%s3639_s5 + $0x8] sm:$0xff] }
  0xd1   : > { %v819_v40 = vpop.f32.mrf.mxu2  ;;  %1049 = vmatpush.msrb.mxu0 %v1022_v26  ;;  %v1034_v27 = vld [vmem:[%s3638_s4 + $0xa0] sm:$0xff]  ;;  %v2189_v26 = vld [vmem:[%s3639_s5 + $0x148] sm:$0xff] }
  0xd2   : > { %v858_v6 = vadd.f32 %v819_v40, %v767_v59  ;;  %v1019_v40 = vld [vmem:[%s3638_s4 + $0x28] sm:$0xff] }
  0xd3   : > { %1050 = vmatpush.msrb.mxu0 %v1021_v29  ;;  %v1144_v59 = vld [vmem:[%s3639_s5 + $0x88] sm:$0xff] }
  0xd4   : > { %1192 = vmatpush.msra.mxu1 %v1144_v59  ;;  %v2215_v29 = vld [vmem:[%s3639_s5 + $0x1e8] sm:$0xff] }
  0xd5   : > { %v2173_v59 = vld [vmem:[%s3639_s5 + $0xc8] sm:$0xff] }
  0xd6   : > { %1193 = vmatpush.msra.mxu1 %v1142_v61  ;;  %v2244_v61 = vld [vmem:[%s3639_s5 + $0x2a0] sm:$0xff] }
  0xd7   : > { %v731_v30 = vpop.f32.mrf.mxu0  ;;  %v757_v31 = vpop.f32.mrf.mxu1 }
  0xd8   : > { %v848_v48 = vpop.f32.mrf.mxu3  ;;  %v769_v53 = vadd.f32 %v731_v30, %v678_v47  ;;  %v768_v22 = vadd.f32 %v757_v31, %v677_v10  ;;  %v764_v31 = vadd.f32 %v2822_v23, %v673_v25  ;;  %v857_v23 = vadd.f32 %v2828_v36, %v766_v9  ;;  %v1032_v36 = vld [vmem:[%s3638_s4 + $0x90] sm:$0xff]  ;;  %v2218_v10 = vld [vmem:[%s3639_s5 + $0x200] sm:$0xf]  ;;  %v2217_v9 = vld [vmem:[%s3639_s5 + $0x1f8] sm:$0xff] }
  0xd9   : > { %v822_v54 = vpop.f32.mrf.mxu2  ;;  %v1016_v47 = vld [vmem:[%s3638_s4 + $0x10] sm:$0xff] }
  0xda   : > { %v860_v63 = vadd.f32 %v822_v54, %v769_v53  ;;  %v859_v33 = vadd.f32 %v848_v48, %v768_v22  ;;  %v855_v41 = vadd.f32 %v2826_v32, %v764_v31  ;;  %v1031_v32 = vld [vmem:[%s3638_s4 + $0x88] sm:$0xff]  ;;  %v1147_v54 = vld [vmem:[%s3639_s5 + $0xa0] sm:$0xf]  ;;  %v2212_v25 = vld [vmem:[%s3639_s5 + $0x1d0] sm:$0xff] }
  0xdb   : > { %v1015_v48 = vld [vmem:[%s3638_s4 + $0x8] sm:$0xff]  ;;  %v2180_v31 = vld [vmem:[%s3639_s5 + $0x100] sm:$0xff] }
  0xdc   : > { %v2219_v22 = vld [vmem:[%s3639_s5 + $0x208] sm:$0xf] }
  0xdf   : > { %v760_v34 = vpop.f32.mrf.mxu1  ;;  %v904_v35 = vpop.f32.mrf.mxu0 }
  0xe0   : > { %v770_v13 = vadd.f32 %v760_v34, %v679_v4  ;;  %v851_v19 = vpop.f32.mrf.mxu3  ;;  %v945_v28 = vadd.f32 %v904_v35, %v854_v21  ;;  %v1020_v35 = vld [vmem:[%s3638_s4 + $0x30] sm:$0xff]  ;;  %v2191_v21 = vld [vmem:[%s3639_s5 + $0x158] sm:$0xf] }
  0xe1   : > { %1051 = vmatpush.msrb.mxu0 %v1020_v35  ;;  %v1133_v4 = vld [vmem:[%s3639_s5 + $0x30] sm:$0xff] }
  0xe2   : > { %v861_v20 = vadd.f32 %v851_v19, %v770_v13  ;;  %v2188_v13 = vld [vmem:[%s3639_s5 + $0x140] sm:$0xff]  ;;  %v2186_v19 = vld [vmem:[%s3639_s5 + $0x130] sm:$0xff] }
  0xe3   : > { %1052 = vmatpush.msrb.mxu0 %v1019_v40  ;;  %v2178_v35 = vld [vmem:[%s3639_s5 + $0xf0] sm:$0xff]  ;;  %v2176_v40 = vld [vmem:[%s3639_s5 + $0xe0] sm:$0xff] }
  0xe5   : > { %1053 = vmatpush.msrb.mxu0 %v1018_v43  ;;  %v2174_v43 = vld [vmem:[%s3639_s5 + $0xd0] sm:$0xff] }
  0xe7   : > { %v907_v37 = vpop.f32.mrf.mxu0  ;;  %v2830_v38 = vpop.f32.mrf.mxu1 }
  0xe8   : > { %v947_v24 = vadd.f32 %v907_v37, %v856_v15  ;;  %v1130_v15 = vld [vmem:[%s3639_s5 + $0x18] sm:$0xff] }
  0xef   : > { %v910_v44 = vpop.f32.mrf.mxu0  ;;  %v2835_v45 = vpop.f32.mrf.mxu1 }
  0xf0   : > { %v949_v16 = vadd.f32 %v910_v44, %v858_v6  ;;  %v948_v42 = vadd.f32 %v2835_v45, %v857_v23  ;;  %v946_v44 = vadd.f32 %v2830_v38, %v855_v41  ;;  %v954_v45 = vld [vmem:[%s3637_s3 + $0x8] sm:$0x3f]  ;;  %v1017_v38 = vld [vmem:[%s3638_s4 + $0x18] sm:$0xff]  ;;  %v1131_v6 = vld [vmem:[%s3639_s5 + $0x20] sm:$0xff] }
  0xf1   : > { %1054 = vmatpush.msrb.mxu0 %v1017_v38  ;;  %v2206_v23 = vld [vmem:[%s3639_s5 + $0x1a0] sm:$0xff]  ;;  %v2204_v41 = vld [vmem:[%s3639_s5 + $0x190] sm:$0xff]  ;;  %v2207_v38 = vld [vmem:[%s3639_s5 + $0x1a8] sm:$0xff] }
  0xf3   : > { %1055 = vmatpush.msrb.mxu0 %v1016_v47  ;;  %v2172_v47 = vld [vmem:[%s3639_s5 + $0xc0] sm:$0xff] }
  0xf5   : > { %1056 = vmatpush.msrb.mxu0 %v1015_v48  ;;  %v2200_v48 = vld [vmem:[%s3639_s5 + $0x170] sm:$0xff] }
  0xf7   : > { %v913_v1 = vpop.f32.mrf.mxu0  ;;  %v939_v2 = vpop.f32.mrf.mxu1  ;;  %1057 = vmatpush.msrb.mxu0 %v1014_v49  ;;  %v2177_v49 = vld [vmem:[%s3639_s5 + $0xe8] sm:$0xff] }
  0xf8   : > { %v951_v7 = vadd.f32 %v913_v1, %v860_v63  ;;  %v950_v37 = vadd.f32 %v939_v2, %v859_v33  ;;  %v1140_v63 = vld [vmem:[%s3639_s5 + $0x68] sm:$0xff]  ;;  %v1138_v1 = vld [vmem:[%s3639_s5 + $0x58] sm:$0xff]  ;;  %v1135_v2 = vld [vmem:[%s3639_s5 + $0x40] sm:$0xff] }
  0xf9   : > { %1194 = vmatpush.msra.mxu1 %v1140_v63  ;;  %2220 = vmatpush.msk.msra.mxu0 %vm871_vm4, %v2218_v10  ;;  %v2208_v33 = vld [vmem:[%s3639_s5 + $0x1b0] sm:$0xff] }
  0xfa   : > { %2154 = vmatpush.msk.msra.mxu2 %vm871_vm4, %v951_v7  ;;  %v1132_v7 = vld [vmem:[%s3639_s5 + $0x28] sm:$0xff]  ;;  %v2272_v63 = vld [vmem:[%s3639_s5 + $0x350] sm:$0xff] }
  0xfb   : > { %1195 = vmatpush.msra.mxu1 %v1138_v1  ;;  %v2199_v1 = vld [vmem:[%s3639_s5 + $0x168] sm:$0xff] }
  0xfc   : > { %981 = vmatpush.msra.mxu2 %v949_v16  ;;  %v2216_v16 = vld [vmem:[%s3639_s5 + $0x1f0] sm:$0xff] }
  0xfd   : > { %1196 = vmatpush.msra.mxu1 %v1136_v3  ;;  %1345 = vmatpush.msra.mxu0 %v2216_v16  ;;  %v2242_v3 = vld [vmem:[%s3639_s5 + $0x290] sm:$0xff] }
  0xfe   : > { %982 = vmatpush.msra.mxu2 %v947_v24  ;;  %v2184_v24 = vld [vmem:[%s3639_s5 + $0x120] sm:$0xff]  ;;  %v2264_v16 = vld [vmem:[%s3639_s5 + $0x310] sm:$0xff] }
  0xff   : > { %v942_v30 = vpop.f32.mrf.mxu1  ;;  %1197 = vmatpush.msra.mxu1 %v1134_v5  ;;  %1346 = vmatpush.msra.mxu0 %v2214_v11  ;;  %v2232_v11 = vld [vmem:[%s3639_s5 + $0x240] sm:$0xff] }
 0x100   : > { %v952_v34 = vadd.f32 %v942_v30, %v861_v20  ;;  %983 = vmatpush.msra.mxu2 %v945_v28  ;;  %v2182_v28 = vld [vmem:[%s3639_s5 + $0x110] sm:$0xff]  ;;  %v2210_v20 = vld [vmem:[%s3639_s5 + $0x1c0] sm:$0xff]  ;;  %v2187_v30 = vld [vmem:[%s3639_s5 + $0x138] sm:$0xff] }
 0x101   : > { %2155 = vmatmul.msk.f32.vlgmr.msra.gmra.mxu2 %vm955_vm5, %v953_v14  ;;  %1198 = vmatpush.msra.mxu1 %v1132_v7  ;;  %v2240_v7 = vld [vmem:[%s3639_s5 + $0x280] sm:$0xff] }
 0x102   : > { %2157 = vmatpush.msk.msra.mxu3 %vm871_vm4, %v952_v34  ;;  %1076 = vmatpush.msrb.mxu2 %v1034_v27  ;;  %v2185_v34 = vld [vmem:[%s3639_s5 + $0x128] sm:$0xff] }
 0x103   : > { %1199 = vmatpush.msra.mxu1 %v1130_v15  ;;  %1347 = vmatpush.msra.mxu0 %v2212_v25  ;;  %v2266_v15 = vld [vmem:[%s3639_s5 + $0x320] sm:$0xff] }
 0x104   : > { %1004 = vmatpush.msra.mxu3 %v950_v37  ;;  %1077 = vmatpush.msrb.mxu2 %v1033_v39  ;;  %v2183_v37 = vld [vmem:[%s3639_s5 + $0x118] sm:$0xff]  ;;  %v2211_v39 = vld [vmem:[%s3639_s5 + $0x1c8] sm:$0xff] }
 0x105   : > { %1200 = vmatpush.msra.mxu1 %v1128_v18  ;;  %1348 = vmatpush.msra.mxu0 %v2210_v20  ;;  %v2262_v18 = vld [vmem:[%s3639_s5 + $0x300] sm:$0xff] }
 0x106   : > { %1005 = vmatpush.msra.mxu3 %v948_v42  ;;  %1078 = vmatpush.msrb.mxu2 %v1032_v36  ;;  %v2181_v42 = vld [vmem:[%s3639_s5 + $0x108] sm:$0xff]  ;;  %v2209_v36 = vld [vmem:[%s3639_s5 + $0x1b8] sm:$0xff]  ;;  %v2228_v20 = vld [vmem:[%s3639_s5 + $0x220] sm:$0xff] }
 0x107   : > { %2223 = vmatpush.msk.msrb.mxu1 %vm871_vm4, %v2219_v22  ;;  %1349 = vmatpush.msra.mxu0 %v2208_v33 }
 0x108   : > { %1006 = vmatpush.msra.mxu3 %v946_v44  ;;  %1079 = vmatpush.msrb.mxu2 %v1031_v32  ;;  %v2202_v32 = vld [vmem:[%s3639_s5 + $0x180] sm:$0xff] }
 0x109   : > { %2158 = vmatmul.msk.f32.vlgmr.msra.gmra.mxu3 %vm955_vm5, %v953_v14  ;;  %2156 = vmatmul.msk.f32.gmra.mxu2 %vm955_vm5, %v954_v45  ;;  %v2213_v14 = vld [vmem:[%s3639_s5 + $0x1d8] sm:$0xff] }
 0x10a   : > { %1080 = vmatpush.msrb.mxu2 %v1030_v46  ;;  %2164 = vmatpush.msk.msrb.mxu3 %vm871_vm4, %v1147_v54  ;;  %v2175_v54 = vld [vmem:[%s3639_s5 + $0xd8] sm:$0xff] }
 0x10b   : > { %1368 = vmatpush.msrb.mxu1 %v2217_v9  ;;  %1350 = vmatpush.msra.mxu0 %v2206_v23  ;;  %v2258_v9 = vld [vmem:[%s3639_s5 + $0x2e0] sm:$0xff] }
 0x10c   : > { %1168 = vmatpush.msrb.mxu3 %v1145_v56  ;;  %2192 = vmatpush.msk.msra.mxu2 %vm871_vm4, %v2190_v8  ;;  %v2246_v56 = vld [vmem:[%s3639_s5 + $0x2b0] sm:$0xf] }
 0x10d   : > { %1369 = vmatpush.msrb.mxu1 %v2215_v29  ;;  %1351 = vmatpush.msra.mxu0 %v2204_v41  ;;  %v2268_v8 = vld [vmem:[%s3639_s5 + $0x330] sm:$0xff]  ;;  %v2275_v41 = vld [vmem:[%s3639_s5 + $0x368] sm:$0xf] }
 0x10e   : > { %1169 = vmatpush.msrb.mxu3 %v1143_v58  ;;  %1259 = vmatpush.msra.mxu2 %v2188_v13  ;;  %v2236_v13 = vld [vmem:[%s3639_s5 + $0x260] sm:$0xff] }
 0x10f   : > { %1370 = vmatpush.msrb.mxu1 %v2213_v14  ;;  %1352 = vmatpush.msra.mxu0 %v2202_v32  ;;  %v2254_v14 = vld [vmem:[%s3639_s5 + $0x2c0] sm:$0xff] }
 0x110   : > { %1170 = vmatpush.msrb.mxu3 %v1141_v60  ;;  %1260 = vmatpush.msra.mxu2 %v2186_v19  ;;  %v2201_v60 = vld [vmem:[%s3639_s5 + $0x178] sm:$0xff] }
 0x111   : > { %2159 = vmatmul.msk.f32.gmra.mxu3 %vm955_vm5, %v954_v45  ;;  %1371 = vmatpush.msrb.mxu1 %v2211_v39  ;;  %v2179_v45 = vld [vmem:[%s3639_s5 + $0xf8] sm:$0xff] }
 0x112   : > { %1171 = vmatpush.msrb.mxu3 %v1139_v62  ;;  %1261 = vmatpush.msra.mxu2 %v2184_v24 }
 0x113   : > { %1372 = vmatpush.msrb.mxu1 %v2209_v36  ;;  %1353 = vmatpush.msra.mxu0 %v2200_v48 }
 0x114   : > { %1172 = vmatpush.msrb.mxu3 %v1137_v0  ;;  %1262 = vmatpush.msra.mxu2 %v2182_v28  ;;  %v2171_v0 = vld [vmem:[%s3639_s5 + $0xb8] sm:$0xff] }
 0x115   : > { %1373 = vmatpush.msrb.mxu1 %v2207_v38 }
 0x116   : > { %1173 = vmatpush.msrb.mxu3 %v1135_v2  ;;  %1263 = vmatpush.msra.mxu2 %v2180_v31 }
 0x118   : > { %1174 = vmatpush.msrb.mxu3 %v1133_v4  ;;  %1264 = vmatpush.msra.mxu2 %v2178_v35  ;;  %v2270_v4 = vld [vmem:[%s3639_s5 + $0x340] sm:$0xff] }
 0x11a   : > { %1175 = vmatpush.msrb.mxu3 %v1131_v6  ;;  %1265 = vmatpush.msra.mxu2 %v2176_v40  ;;  %v2247_v40 = vld [vmem:[%s3639_s5 + $0x2b8] sm:$0xf] }
 0x11c   : > { %1176 = vmatpush.msrb.mxu3 %v1129_v12  ;;  %1266 = vmatpush.msra.mxu2 %v2174_v43  ;;  %v2238_v12 = vld [vmem:[%s3639_s5 + $0x270] sm:$0xff]  ;;  %v2245_v43 = vld [vmem:[%s3639_s5 + $0x2a8] sm:$0xff] }
 0x11e   : > { %1177 = vmatpush.msrb.mxu3 %v1127_v17  ;;  %1267 = vmatpush.msra.mxu2 %v2172_v47  ;;  %v2234_v17 = vld [vmem:[%s3639_s5 + $0x250] sm:$0xff]  ;;  %v2271_v47 = vld [vmem:[%s3639_s5 + $0x348] sm:$0xff] }
 0x120   : > { %2195 = vmatpush.msk.msra.mxu3 %vm871_vm4, %v2191_v21  ;;  %v2260_v21 = vld [vmem:[%s3639_s5 + $0x2f0] sm:$0xff] }
 0x122   : > { %1282 = vmatpush.msra.mxu3 %v2189_v26  ;;  %v2230_v26 = vld [vmem:[%s3639_s5 + $0x230] sm:$0xff] }
 0x124   : > { %1283 = vmatpush.msra.mxu3 %v2187_v30  ;;  %v2256_v30 = vld [vmem:[%s3639_s5 + $0x2d0] sm:$0xff] }
 0x126   : > { %1284 = vmatpush.msra.mxu3 %v2185_v34  ;;  %v2226_v34 = vld [vmem:[%s3639_s5 + $0x210] sm:$0xff] }
 0x128   : > { %1285 = vmatpush.msra.mxu3 %v2183_v37 }
 0x12a   : > { %1286 = vmatpush.msra.mxu3 %v2181_v42 }
 0x12c   : > { %1287 = vmatpush.msra.mxu3 %v2179_v45 }
 0x12e   : > { %1288 = vmatpush.msra.mxu3 %v2177_v49  ;;  %v2241_v49 = vld [vmem:[%s3639_s5 + $0x288] sm:$0xff] }
 0x130   : > { %1289 = vmatpush.msra.mxu3 %v2175_v54  ;;  %v2267_v54 = vld [vmem:[%s3639_s5 + $0x328] sm:$0xff] }
 0x132   : > { %1290 = vmatpush.msra.mxu3 %v2173_v59 }
 0x134   : > { %1291 = vmatpush.msra.mxu3 %v2171_v0  ;;  %v2235_v0 = vld [vmem:[%s3639_s5 + $0x258] sm:$0xff] }
 0x184   : > { %v985_v50 = vpop.f32.mrf.mxu2 }
 0x185   : > { %1058 = vmatmul.f32.vlgmr.msrb.gmra.mxu0 %v985_v50  ;;  %v2205_v50 = vld [vmem:[%s3639_s5 + $0x198] sm:$0xff] }
 0x186   : > { %1374 = vmatpush.msrb.mxu1 %v2205_v50  ;;  %v2269_v50 = vld [vmem:[%s3639_s5 + $0x338] sm:$0xff] }
 0x188   : > { %1375 = vmatpush.msrb.mxu1 %v2203_v55 }
 0x18a   : > { %1376 = vmatpush.msrb.mxu1 %v2201_v60  ;;  %v2237_v60 = vld [vmem:[%s3639_s5 + $0x268] sm:$0xff] }
 0x18c   : > { %v1008_v51 = vpop.f32.mrf.mxu3  ;;  %v988_v52 = vpop.f32.mrf.mxu2  ;;  %1377 = vmatpush.msrb.mxu1 %v2199_v1  ;;  %v2263_v1 = vld [vmem:[%s3639_s5 + $0x308] sm:$0xff] }
 0x18d   : > { %2160 = vmatmul.msk.f32.vlgmr.msrb.gmra.mxu2 %vm1035_vm6, %v1008_v51  ;;  %1061 = vmatmul.f32.gmra.mxu0 %v988_v52  ;;  %v2170_v52 = vld [vmem:[%s3639_s5 + $0xb0] sm:$0xff] }
 0x18e   : > { %1268 = vmatpush.msra.mxu2 %v2170_v52 }
 0x190   : > { %2248 = vmatpush.msk.msrb.mxu2 %vm871_vm4, %v2246_v56 }
 0x192   : > { %1431 = vmatpush.msrb.mxu2 %v2244_v61  ;;  %v2265_v61 = vld [vmem:[%s3639_s5 + $0x318] sm:$0xff] }
 0x194   : > { %v1011_v53 = vpop.f32.mrf.mxu3  ;;  %1432 = vmatpush.msrb.mxu2 %v2242_v3  ;;  %v2261_v3 = vld [vmem:[%s3639_s5 + $0x2f8] sm:$0xff] }
 0x195   : > { %2161 = vmatmul.msk.f32.gmra.mxu2 %vm1035_vm6, %v1011_v53  ;;  %v2198_v53 = vld [vmem:[%s3639_s5 + $0x160] sm:$0xff]  ;;  %vm1706_vm6 = vcmask 654336  }
 0x196   : > { %1354 = vmatpush.msra.mxu0 %v2198_v53  ;;  %1433 = vmatpush.msrb.mxu2 %v2240_v7  ;;  %v2239_v53 = vld [vmem:[%s3639_s5 + $0x278] sm:$0xff] }
 0x197   : > { %v2257_v7 = vld [vmem:[%s3639_s5 + $0x2d8] sm:$0xff] }
 0x198   : > { %2276 = vmatpush.msk.msrb.mxu0 %vm871_vm4, %v2274_v57  ;;  %1434 = vmatpush.msrb.mxu2 %v2238_v12  ;;  %v2227_v12 = vld [vmem:[%s3639_s5 + $0x218] sm:$0xff] }
 0x19a   : > { %1517 = vmatpush.msrb.mxu0 %v2272_v63  ;;  %1435 = vmatpush.msrb.mxu2 %v2236_v13 }
 0x19c   : > { %1518 = vmatpush.msrb.mxu0 %v2270_v4  ;;  %1436 = vmatpush.msrb.mxu2 %v2234_v17  ;;  %v2231_v4 = vld [vmem:[%s3639_s5 + $0x238] sm:$0xff] }
 0x19e   : > { %1519 = vmatpush.msrb.mxu0 %v2268_v8  ;;  %1437 = vmatpush.msrb.mxu2 %v2232_v11 }
 0x1a0   : > { %1520 = vmatpush.msrb.mxu0 %v2266_v15  ;;  %1438 = vmatpush.msrb.mxu2 %v2230_v26  ;;  %v2255_v15 = vld [vmem:[%s3639_s5 + $0x2c8] sm:$0xff] }
 0x1a2   : > { %1521 = vmatpush.msrb.mxu0 %v2264_v16  ;;  %1439 = vmatpush.msrb.mxu2 %v2228_v20  ;;  %v1627_v20 = vld [vmem:[%s3642_s8 + $0x70] sm:$0xff] }
 0x1a4   : > { %1522 = vmatpush.msrb.mxu0 %v2262_v18  ;;  %1440 = vmatpush.msrb.mxu2 %v2226_v34 }
 0x1a6   : > { %1523 = vmatpush.msrb.mxu0 %v2260_v21 }
 0x1a8   : > { %1524 = vmatpush.msrb.mxu0 %v2258_v9 }
 0x1aa   : > { %1525 = vmatpush.msrb.mxu0 %v2256_v30 }
 0x1ac   : > { %1526 = vmatpush.msrb.mxu0 %v2254_v14  ;;  %v1624_v14 = vld [vmem:[%s3642_s8 + $0x58] sm:$0xff] }
 0x202   : > { %v1059_v27 = vpop.f32.mrf.mxu0 }
 0x20a   : > { %v1062_v58 = vpop.f32.mrf.mxu0 }
 0x210   : > { %v1082_v44 = vpop.f32.mrf.mxu2 }
 0x211   : > { %v1083_v46 = vadd.f32 %v1082_v44, %v1059_v27  ;;  %v2273_v44 = vld [vmem:[%s3639_s5 + $0x358] sm:$0xff] }
 0x213   : > { %v2162_v51 = vmul.f32 -1.442695, %v1083_v46  ;;  %v2243_v46 = vld [vmem:[%s3639_s5 + $0x298] sm:$0xff] }
 0x215   : > { %2385 = vpow2.f32 %v2162_v51 }
 0x218   : > { %v1085_v62 = vpop.f32.mrf.mxu2 }
 0x219   : > { %v1086_v2 = vadd.f32 %v1085_v62, %v1062_v58 }
 0x21b   : > { %v2386_v5 = vpop.eup %2385  ;;  %v2163_v6 = vmul.f32 -1.442695, %v1086_v2  ;;  %v2233_v2 = vld [vmem:[%s3639_s5 + $0x248] sm:$0xff] }
 0x21c   : > { %v1094_v10 = vadd.f32 1.0, %v2386_v5  ;;  %v2259_v5 = vld [vmem:[%s3639_s5 + $0x2e8] sm:$0xff] }
 0x21d   : > { %2387 = vpow2.f32 %v2163_v6  ;;  %v2229_v6 = vld [vmem:[%s3639_s5 + $0x228] sm:$0xff] }
 0x21e   : > { %2389 = vrcp.f32 %v1094_v10  ;;  %v1107_v29 = vand.u32 2147483648, %v1094_v10  ;;  %v1105_v33 = vand.u32 2147483647, %v1094_v10  ;;  %vm1101_vm8 = vweird.f32 %v1094_v10 }
 0x220   : > { %v1108_v23 = vor.u32 1.1754944e-38, %v1107_v29  ;;  %vm1106_vm11 = vcmp.eq.f32.partialorder %v1105_v33, 8.507059e+37  ;;  %v1626_v29 = vld [vmem:[%s3642_s8 + $0x68] sm:$0xff]  ;;  %v1625_v33 = vld [vmem:[%s3642_s8 + $0x60] sm:$0xff] }
 0x223   : > { %v2388_v19 = vpop.eup %2387 }
 0x224   : > { %v2390_v22 = vpop.eup %2389  ;;  %v1095_v24 = vadd.f32 1.0, %v2388_v19 }
 0x225   : > { %v1097_v25 = vmul.f32 %v2390_v22, %v1094_v10  ;;  %vm1102_vm7 = vweird.f32 %v2390_v22 }
 0x226   : > { %2391 = vrcp.f32 %v1095_v24  ;;  %vm1103_vm9 = vmor %vm1101_vm8, %vm1102_vm7  ;;  %v1122_v32 = vand.u32 2147483648, %v1095_v24  ;;  %v1120_v38 = vand.u32 2147483647, %v1095_v24  ;;  %vm1116_vm13 = vweird.f32 %v1095_v24 }
 0x227   : > { %v1098_v28 = vsub.f32 1.0, %v1097_v25 }
 0x228   : > { %v1123_v51 = vor.u32 1.1754944e-38, %v1122_v32  ;;  %vm1121_vm15 = vcmp.eq.f32.partialorder %v1120_v38, 8.507059e+37  ;;  %v1620_v38 = vld [vmem:[%s3642_s8 + $0x38] sm:$0xff] }
 0x229   : > { %v1099_v31 = vmul.f32 %v2390_v22, %v1098_v28  ;;  %v1628_v28 = vld [vmem:[%s3642_s8 + $0x78] sm:$0xff] }
 0x22b   : > { %v1100_v27 = vadd.f32 %v2390_v22, %v1099_v31 }
 0x22c   : > { %v2392_v35 = vpop.eup %2391 }
 0x22d   : > { %v1112_v37 = vmul.f32 %v2392_v35, %v1095_v24  ;;  %v1104_v39 = vsel %vm1103_vm9, %v2390_v22, %v1100_v27  ;;  %vm1117_vm12 = vweird.f32 %v2392_v35  ;;  %v1126_v27 = vld [vmem:[%s3640_s6] sm:$0x3] }
 0x22e   : > { %v3200_v42 = vsel %vm1106_vm11, %v1108_v23, %v1104_v39  ;;  %vm1118_vm14 = vmor %vm1116_vm13, %vm1117_vm12  ;;  %v1622_v39 = vld [vmem:[%s3642_s8 + $0x48] sm:$0xff]  ;;  %vm1906_vm12 = vcmask 982016  }
 0x22f   : > { %v1113_v36 = vsub.f32 1.0, %v1112_v37  ;;  %2165 = vmatmul.msk.f32.vlgmr.msrb.gmra.mxu3 %vm1149_vm10, %v3200_v42  ;;  %2168 = vmatmul.msk.f32.vlgmr.msra.gmra.mxu1 %vm1149_vm10, %v3200_v42  ;;  %v1240_v56 = vrot.slane %v3200_v42, 1  ;;  %v1326_v58 = vrot.slane %v3200_v42, 2  ;;  %v1412_v13 = vrot.slane %v3200_v42, 3  ;;  %v1623_v37 = vld [vmem:[%s3642_s8 + $0x50] sm:$0xff] }
 0x230   : > { %2251 = vmatpush.msk.msrb.mxu3 %vm871_vm4, %v2247_v40  ;;  %2279 = vmatpush.msk.msra.mxu1 %vm871_vm4, %v2275_v41  ;;  %v1498_v16 = vrot.slane %v3200_v42, 4 }
 0x231   : > { %v1114_v45 = vmul.f32 %v2392_v35, %v1113_v36 }
 0x232   : > { %1454 = vmatpush.msrb.mxu3 %v2245_v43  ;;  %1540 = vmatpush.msra.mxu1 %v2273_v44  ;;  %v1621_v43 = vld [vmem:[%s3642_s8 + $0x40] sm:$0xff]  ;;  %v1210_v44 = vperm.slane %v1126_v27, 1 }
 0x233   : > { %v1115_v48 = vadd.f32 %v2392_v35, %v1114_v45 }
 0x234   : > { %1455 = vmatpush.msrb.mxu3 %v2243_v46  ;;  %1541 = vmatpush.msra.mxu1 %v2271_v47 }
 0x235   : > { %v1119_v52 = vsel %vm1118_vm14, %v2392_v35, %v1115_v48  ;;  %v1209_v35 = vperm.slane %v1126_v27, 0  ;;  %v1619_v48 = vld [vmem:[%s3642_s8 + $0x30] sm:$0xff]  ;;  %v2292_v27 = vld [vmem:[%s3643_s9 + $0x68] sm:$0xff] }
 0x236   : > { %v1124_v55 = vsel %vm1121_vm15, %v1123_v51, %v1119_v52  ;;  %1456 = vmatpush.msrb.mxu3 %v2241_v49  ;;  %1542 = vmatpush.msra.mxu1 %v2269_v50 }
 0x237   : > { %2166 = vmatmul.msk.f32.gmra.mxu3 %vm1149_vm10, %v1124_v55  ;;  %2169 = vmatmul.msk.f32.gmra.mxu1 %vm1149_vm10, %v1124_v55  ;;  %v1241_v57 = vrot.slane %v1124_v55, 1  ;;  %v1327_v59 = vrot.slane %v1124_v55, 2  ;;  %v1413_v8 = vrot.slane %v1124_v55, 3  ;;  %v1499_v10 = vrot.slane %v1124_v55, 4 }
 0x238   : > { %1457 = vmatpush.msrb.mxu3 %v2239_v53  ;;  %1543 = vmatpush.msra.mxu1 %v2267_v54  ;;  %v1618_v53 = vld [vmem:[%s3642_s8 + $0x28] sm:$0xff] }
 0x239   : > { %v1242_v62 = vsel %vm598_vm1, %v1240_v56, %v1241_v57  ;;  %v1328_v63 = vsel %vm689_vm3, %v1326_v58, %v1327_v59  ;;  %v1414_v17 = vsel %vm780_vm2, %v1412_v13, %v1413_v8  ;;  %v1500_v18 = vsel %vm871_vm4, %v1498_v16, %v1499_v10  ;;  %v1629_v13 = vld [vmem:[%s3642_s8 + $0x80] sm:$0xff]  ;;  %v1615_v16 = vld [vmem:[%s3642_s8 + $0x10] sm:$0xff] }
 0x23a   : > { %2193 = vmatmul.msk.f32.vlgmr.msra.gmra.mxu2 %vm1149_vm10, %v1242_v62  ;;  %2221 = vmatmul.msk.f32.vlgmr.msra.gmra.mxu0 %vm1149_vm10, %v1328_v63  ;;  %vm1566_vm1 = vcmask 1041408   ;;  %vm1562_vm2 = vcmask 80896  }
 0x23b   : > { %1458 = vmatpush.msrb.mxu3 %v2237_v60  ;;  %1544 = vmatpush.msra.mxu1 %v2265_v61 }
 0x23c   : > { %1636 = vmatpush.msra.mxu0 %v1628_v28  ;;  %v1702_v28 = vld [vmem:[%s3643_s9 + $0x30] sm:$0xff] }
 0x23d   : > { %1459 = vmatpush.msrb.mxu3 %v2235_v0  ;;  %1545 = vmatpush.msra.mxu1 %v2263_v1 }
 0x23e   : > { %1637 = vmatpush.msra.mxu0 %v1627_v20  ;;  %v2295_v20 = vld [vmem:[%s3643_s9 + $0x80] sm:$0xff] }
 0x23f   : > { %2196 = vmatmul.msk.f32.vlgmr.msra.gmra.mxu3 %vm1149_vm10, %v1242_v62  ;;  %2224 = vmatmul.msk.f32.vlgmr.msrb.gmra.mxu1 %vm1149_vm10, %v1328_v63 }
 0x240   : > { %1460 = vmatpush.msrb.mxu3 %v2233_v2  ;;  %1546 = vmatpush.msra.mxu1 %v2261_v3 }
 0x241   : > { %1638 = vmatpush.msra.mxu0 %v1626_v29  ;;  %v2294_v29 = vld [vmem:[%s3643_s9 + $0x78] sm:$0xff] }
 0x242   : > { %2194 = vmatmul.msk.f32.gmra.mxu2 %vm1149_vm10, %v1241_v57  ;;  %2222 = vmatmul.msk.f32.gmra.mxu0 %vm1149_vm10, %v1327_v59 }
 0x243   : > { %1461 = vmatpush.msrb.mxu3 %v2231_v4  ;;  %1547 = vmatpush.msra.mxu1 %v2259_v5  ;;  %v1632_v4 = vld [vmem:[%s3642_s8 + $0x98] sm:$0xff] }
 0x244   : > { %1639 = vmatpush.msra.mxu0 %v1625_v33  ;;  %v2293_v33 = vld [vmem:[%s3643_s9 + $0x70] sm:$0xff] }
 0x245   : > { %1462 = vmatpush.msrb.mxu3 %v2229_v6  ;;  %1548 = vmatpush.msra.mxu1 %v2257_v7  ;;  %v1561_v6 = vld [vmem:[%s3641_s7] sm:$0x1f] }
 0x246   : > { %1640 = vmatpush.msra.mxu0 %v1624_v14  ;;  %v2309_v14 = vld [vmem:[%s3643_s9 + $0xe8] sm:$0xff] }
 0x247   : > { %2197 = vmatmul.msk.f32.gmra.mxu3 %vm1149_vm10, %v1241_v57  ;;  %2225 = vmatmul.msk.f32.gmra.mxu1 %vm1149_vm10, %v1327_v59  ;;  %v1617_v59 = vld [vmem:[%s3642_s8 + $0x20] sm:$0xff] }
 0x248   : > { %1463 = vmatpush.msrb.mxu3 %v2227_v12  ;;  %1549 = vmatpush.msra.mxu1 %v2255_v15  ;;  %v1630_v12 = vld [vmem:[%s3642_s8 + $0x88] sm:$0xff]  ;;  %v1616_v15 = vld [vmem:[%s3642_s8 + $0x18] sm:$0xff] }
 0x249   : > { %1641 = vmatpush.msra.mxu0 %v1623_v37  ;;  %v2291_v37 = vld [vmem:[%s3643_s9 + $0x60] sm:$0xff] }
 0x24a   : > { %2249 = vmatmul.msk.f32.vlgmr.msrb.gmra.mxu2 %vm1149_vm10, %v1414_v17  ;;  %2277 = vmatmul.msk.f32.vlgmr.msrb.gmra.mxu0 %vm1149_vm10, %v1500_v18 }
 0x24b   : > { %1642 = vmatpush.msra.mxu0 %v1622_v39  ;;  %v1697_v39 = vld [vmem:[%s3643_s9 + $0x8] sm:$0xff] }
 0x24d   : > { %1643 = vmatpush.msra.mxu0 %v1621_v43  ;;  %v2320_v43 = vld [vmem:[%s3643_s9 + $0x138] sm:$0xff] }
 0x24f   : > { %2252 = vmatmul.msk.f32.vlgmr.msrb.gmra.mxu3 %vm1149_vm10, %v1414_v17  ;;  %2280 = vmatmul.msk.f32.vlgmr.msra.gmra.mxu1 %vm1149_vm10, %v1500_v18  ;;  %v1614_v17 = vld [vmem:[%s3642_s8 + $0x8] sm:$0xff]  ;;  %v1613_v18 = vld [vmem:[%s3642_s8] sm:$0xff] }
 0x250   : > { %1644 = vmatpush.msra.mxu0 %v1620_v38  ;;  %v2319_v38 = vld [vmem:[%s3643_s9 + $0x130] sm:$0xff] }
 0x252   : > { %2250 = vmatmul.msk.f32.gmra.mxu2 %vm1149_vm10, %v1413_v8  ;;  %2278 = vmatmul.msk.f32.gmra.mxu0 %vm1149_vm10, %v1499_v10 }
 0x253   : > { %1645 = vmatpush.msra.mxu0 %v1619_v48  ;;  %v2318_v48 = vld [vmem:[%s3643_s9 + $0x128] sm:$0xff] }
 0x255   : > { %1646 = vmatpush.msra.mxu0 %v1618_v53  ;;  %v2302_v53 = vld [vmem:[%s3643_s9 + $0xb0] sm:$0xff] }
 0x257   : > { %2253 = vmatmul.msk.f32.gmra.mxu3 %vm1149_vm10, %v1413_v8  ;;  %2281 = vmatmul.msk.f32.gmra.mxu1 %vm1149_vm10, %v1499_v10  ;;  %v1631_v8 = vld [vmem:[%s3642_s8 + $0x90] sm:$0xff] }
 0x258   : > { %1647 = vmatpush.msra.mxu0 %v1617_v59  ;;  %v2315_v59 = vld [vmem:[%s3643_s9 + $0x110] sm:$0xff] }
 0x25a   : > { %1648 = vmatpush.msra.mxu0 %v1616_v15 }
 0x25c   : > { %1649 = vmatpush.msra.mxu0 %v1615_v16 }
 0x25e   : > { %1650 = vmatpush.msra.mxu0 %v1614_v17 }
 0x260   : > { %1651 = vmatpush.msra.mxu0 %v1613_v18 }
 0x2ac   : > { %v1202_v19 = vpop.f32.mrf.mxu1 }
 0x2ad   : > { %v1214_v49 = vadd.f32 %v1210_v44, %v1202_v19 }
 0x2b2   : > { %v1179_v11 = vpop.f32.mrf.mxu3 }
 0x2b3   : > { %v1213_v42 = vadd.f32 %v1209_v35, %v1179_v11 }
 0x2b4   : > { %v1205_v21 = vpop.f32.mrf.mxu1 }
 0x2b5   : > { %v1216_v50 = vadd.f32 %v1210_v44, %v1205_v21  ;;  %v1705_v21 = vld [vmem:[%s3643_s9 + $0x48] sm:$0xff]  ;;  %v2289_v44 = vld [vmem:[%s3643_s9 + $0x50] sm:$0xff] }
 0x2b6   : > { %1716 = vmatpush.msrb.mxu1 %v1705_v21 }
 0x2b7   : > { %v1356_v22 = vpop.f32.mrf.mxu0 }
 0x2ba   : > { %v1182_v24 = vpop.f32.mrf.mxu3 }
 0x2bb   : > { %v1215_v36 = vadd.f32 %v1209_v35, %v1182_v24  ;;  %v1704_v24 = vld [vmem:[%s3643_s9 + $0x40] sm:$0xff]  ;;  %v1698_v35 = vld [vmem:[%s3643_s9 + $0x10] sm:$0xff] }
 0x2bc   : > { %v1379_v26 = vpop.f32.mrf.mxu1  ;;  %1717 = vmatpush.msrb.mxu1 %v1704_v24 }
 0x2bd   : > { %v1270_v25 = vpop.f32.mrf.mxu2 }
 0x2be   : > { %v1299_v32 = vadd.f32 %v1270_v25, %v1213_v42  ;;  %v2297_v25 = vld [vmem:[%s3643_s9 + $0x90] sm:$0xff]  ;;  %v1696_v42 = vld [vmem:[%s3643_s9] sm:$0xff] }
 0x2bf   : > { %v1359_v30 = vpop.f32.mrf.mxu0 }
 0x2c0   : > { %v1385_v51 = vadd.f32 %v1356_v22, %v1299_v32  ;;  %v2298_v22 = vld [vmem:[%s3643_s9 + $0x98] sm:$0xff]  ;;  %v2331_v32 = vld [vmem:[%s3643_s9 + $0x188] sm:$0xff] }
 0x2c2   : > { %v1293_v9 = vpop.f32.mrf.mxu3 }
 0x2c3   : > { %v1300_v54 = vadd.f32 %v1293_v9, %v1214_v49  ;;  %v2296_v9 = vld [vmem:[%s3643_s9 + $0x88] sm:$0xff]  ;;  %v2329_v49 = vld [vmem:[%s3643_s9 + $0x178] sm:$0xff] }
 0x2c4   : > { %v1382_v34 = vpop.f32.mrf.mxu1 }
 0x2c5   : > { %v1273_v31 = vpop.f32.mrf.mxu2  ;;  %v1386_v62 = vadd.f32 %v1379_v26, %v1300_v54  ;;  %v1703_v26 = vld [vmem:[%s3643_s9 + $0x38] sm:$0xff] }
 0x2c6   : > { %v1301_v45 = vadd.f32 %v1273_v31, %v1215_v36  ;;  %1718 = vmatpush.msrb.mxu1 %v1703_v26  ;;  %v1700_v31 = vld [vmem:[%s3643_s9 + $0x20] sm:$0xff]  ;;  %v2306_v36 = vld [vmem:[%s3643_s9 + $0xd0] sm:$0xff]  ;;  %v2316_v54 = vld [vmem:[%s3643_s9 + $0x118] sm:$0xff] }
 0x2c7   : > { %v1528_v40 = vpop.f32.mrf.mxu0 }
 0x2c8   : > { %v1387_v52 = vadd.f32 %v1359_v30, %v1301_v45  ;;  %1719 = vmatpush.msrb.mxu1 %v1702_v28  ;;  %v1701_v30 = vld [vmem:[%s3643_s9 + $0x28] sm:$0xff]  ;;  %v1904_v28 = vld [vmem:[%s3645_s11 + $0x70] sm:$0xff] }
 0x2c9   : > { %v2305_v45 = vld [vmem:[%s3643_s9 + $0xc8] sm:$0xff] }
 0x2ca   : > { %v1296_v23 = vpop.f32.mrf.mxu3  ;;  %1720 = vmatpush.msrb.mxu1 %v1701_v30  ;;  %v1902_v30 = vld [vmem:[%s3645_s11 + $0x60] sm:$0xff] }
 0x2cb   : > { %v1302_v55 = vadd.f32 %v1296_v23, %v1216_v50  ;;  %v2308_v23 = vld [vmem:[%s3643_s9 + $0xe0] sm:$0xff]  ;;  %v2303_v50 = vld [vmem:[%s3643_s9 + $0xb8] sm:$0xff] }
 0x2cc   : > { %v1551_v46 = vpop.f32.mrf.mxu1  ;;  %1721 = vmatpush.msrb.mxu1 %v1700_v31  ;;  %v1900_v31 = vld [vmem:[%s3645_s11 + $0x50] sm:$0xff] }
 0x2cd   : > { %v1442_v41 = vpop.f32.mrf.mxu2  ;;  %v1388_v63 = vadd.f32 %v1382_v34, %v1302_v55  ;;  %v1699_v34 = vld [vmem:[%s3643_s9 + $0x18] sm:$0xff]  ;;  %v2327_v55 = vld [vmem:[%s3643_s9 + $0x168] sm:$0xff] }
 0x2ce   : > { %v1471_v57 = vadd.f32 %v1442_v41, %v1385_v51  ;;  %1722 = vmatpush.msrb.mxu1 %v1699_v34  ;;  %v2290_v41 = vld [vmem:[%s3643_s9 + $0x58] sm:$0xff]  ;;  %v2317_v51 = vld [vmem:[%s3643_s9 + $0x120] sm:$0xff] }
 0x2cf   : > { %v1531_v60 = vpop.f32.mrf.mxu0  ;;  %v1898_v34 = vld [vmem:[%s3645_s11 + $0x40] sm:$0xff] }
 0x2d0   : > { %v1557_v0 = vadd.f32 %v1528_v40, %v1471_v57  ;;  %1723 = vmatpush.msrb.mxu1 %v1698_v35  ;;  %v2307_v40 = vld [vmem:[%s3643_s9 + $0xd8] sm:$0xff]  ;;  %v2326_v57 = vld [vmem:[%s3643_s9 + $0x160] sm:$0xff] }
 0x2d1   : > { %v1695_v35 = vld [vmem:[%s3644_s10] sm:$0x1] }
 0x2d2   : > { %v1465_v47 = vpop.f32.mrf.mxu3  ;;  %1724 = vmatpush.msrb.mxu1 %v1697_v39  ;;  %v1894_v39 = vld [vmem:[%s3645_s11 + $0x20] sm:$0xff] }
 0x2d3   : > { %v1472_v2 = vadd.f32 %v1465_v47, %v1386_v62  ;;  %v2304_v47 = vld [vmem:[%s3643_s9 + $0xc0] sm:$0xff]  ;;  %v2314_v62 = vld [vmem:[%s3643_s9 + $0x108] sm:$0xff] }
 0x2d4   : > { %v1554_v5 = vpop.f32.mrf.mxu1  ;;  %1725 = vmatpush.msrb.mxu1 %v1696_v42 }
 0x2d5   : > { %v1445_v56 = vpop.f32.mrf.mxu2  ;;  %v1558_v10 = vadd.f32 %v1551_v46, %v1472_v2  ;;  %v2330_v46 = vld [vmem:[%s3643_s9 + $0x180] sm:$0xff] }
 0x2d6   : > { %v1473_v58 = vadd.f32 %v1445_v56, %v1387_v52  ;;  %1821 = vmatpush.msra.mxu1 %v2320_v43  ;;  %v2328_v52 = vld [vmem:[%s3643_s9 + $0x170] sm:$0xff]  ;;  %v2313_v2 = vld [vmem:[%s3643_s9 + $0x100] sm:$0xff] }
 0x2d8   : > { %v1559_v61 = vadd.f32 %v1531_v60, %v1473_v58  ;;  %1822 = vmatpush.msra.mxu1 %v2319_v38  ;;  %v2301_v58 = vld [vmem:[%s3643_s9 + $0xa8] sm:$0xff]  ;;  %v1890_v38 = vld [vmem:[%s3645_s11] sm:$0xff] }
 0x2da   : > { %v1468_v1 = vpop.f32.mrf.mxu3  ;;  %2282 = vmatpush.msk.msra.mxu2 %vm1566_vm1, %v1559_v61  ;;  %1823 = vmatpush.msra.mxu1 %v2318_v48  ;;  %v2300_v61 = vld [vmem:[%s3643_s9 + $0xa0] sm:$0xff] }
 0x2db   : > { %v1474_v3 = vadd.f32 %v1468_v1, %v1388_v63  ;;  %v2324_v1 = vld [vmem:[%s3643_s9 + $0x150] sm:$0xff] }
 0x2dc   : > { %1588 = vmatpush.msra.mxu2 %v1557_v0  ;;  %1824 = vmatpush.msra.mxu1 %v2317_v51  ;;  %v2325_v0 = vld [vmem:[%s3643_s9 + $0x158] sm:$0xff] }
 0x2dd   : > { %v1560_v7 = vadd.f32 %v1554_v5, %v1474_v3  ;;  %2283 = vmatmul.msk.f32.vlgmr.msra.gmra.mxu2 %vm1562_vm2, %v1561_v6  ;;  %v2312_v5 = vld [vmem:[%s3643_s9 + $0xf8] sm:$0xff] }
 0x2de   : > { %1668 = vmatpush.msrb.mxu2 %v1632_v4  ;;  %1825 = vmatpush.msra.mxu1 %v2316_v54  ;;  %v2323_v4 = vld [vmem:[%s3643_s9 + $0x148] sm:$0xff] }
 0x2df   : > { %2284 = vmatpush.msk.msra.mxu3 %vm1566_vm1, %v1560_v7  ;;  %v2311_v7 = vld [vmem:[%s3643_s9 + $0xf0] sm:$0xff] }
 0x2e0   : > { %1669 = vmatpush.msrb.mxu2 %v1631_v8  ;;  %1826 = vmatpush.msra.mxu1 %v2315_v59 }
 0x2e1   : > { %1608 = vmatpush.msra.mxu3 %v1558_v10 }
 0x2e2   : > { %2285 = vmatmul.msk.f32.vlgmr.msra.gmra.mxu3 %vm1562_vm2, %v1561_v6  ;;  %1670 = vmatpush.msrb.mxu2 %v1630_v12  ;;  %v2322_v6 = vld [vmem:[%s3643_s9 + $0x140] sm:$0xff] }
 0x2e3   : > { %1751 = vmatpush.msrb.mxu3 %v2298_v22  ;;  %1827 = vmatpush.msra.mxu1 %v2314_v62 }
 0x2e4   : > { %1671 = vmatpush.msrb.mxu2 %v1629_v13 }
 0x2e5   : > { %1752 = vmatpush.msrb.mxu3 %v2297_v25  ;;  %1828 = vmatpush.msra.mxu1 %v2313_v2  ;;  %v1956_v2 = vld [vmem:[%s3647_s13 + $0x38] sm:$0xff] }
 0x2e6   : > { %1786 = vmatpush.msra.mxu2 %v2309_v14  ;;  %v1897_v14 = vld [vmem:[%s3645_s11 + $0x38] sm:$0xff] }
 0x2e7   : > { %1753 = vmatpush.msrb.mxu3 %v2296_v9  ;;  %1829 = vmatpush.msra.mxu1 %v2312_v5  ;;  %v1953_v5 = vld [vmem:[%s3647_s13 + $0x20] sm:$0xff] }
 0x2e8   : > { %1787 = vmatpush.msra.mxu2 %v2308_v23 }
 0x2e9   : > { %1754 = vmatpush.msrb.mxu3 %v2295_v20  ;;  %1830 = vmatpush.msra.mxu1 %v2311_v7  ;;  %v1903_v20 = vld [vmem:[%s3645_s11 + $0x68] sm:$0xff]  ;;  %v1951_v7 = vld [vmem:[%s3647_s13 + $0x10] sm:$0xff] }
 0x2ea   : > { %1788 = vmatpush.msra.mxu2 %v2307_v40 }
 0x2eb   : > { %1755 = vmatpush.msrb.mxu3 %v2294_v29  ;;  %v1901_v29 = vld [vmem:[%s3645_s11 + $0x58] sm:$0xff] }
 0x2ec   : > { %1789 = vmatpush.msra.mxu2 %v2306_v36  ;;  %v1892_v36 = vld [vmem:[%s3645_s11 + $0x10] sm:$0xff] }
 0x2ed   : > { %1756 = vmatpush.msrb.mxu3 %v2293_v33  ;;  %v1899_v33 = vld [vmem:[%s3645_s11 + $0x48] sm:$0xff] }
 0x2ee   : > { %1790 = vmatpush.msra.mxu2 %v2305_v45 }
 0x2ef   : > { %1757 = vmatpush.msrb.mxu3 %v2292_v27  ;;  %v1896_v27 = vld [vmem:[%s3645_s11 + $0x30] sm:$0xff] }
 0x2f0   : > { %1791 = vmatpush.msra.mxu2 %v2304_v47 }
 0x2f1   : > { %1758 = vmatpush.msrb.mxu3 %v2291_v37  ;;  %v1895_v37 = vld [vmem:[%s3645_s11 + $0x28] sm:$0xff] }
 0x2f2   : > { %1792 = vmatpush.msra.mxu2 %v2303_v50 }
 0x2f3   : > { %1759 = vmatpush.msrb.mxu3 %v2290_v41  ;;  %v1893_v41 = vld [vmem:[%s3645_s11 + $0x18] sm:$0xff] }
 0x2f4   : > { %1793 = vmatpush.msra.mxu2 %v2302_v53 }
 0x2f5   : > { %1760 = vmatpush.msrb.mxu3 %v2289_v44 }
 0x2f6   : > { %1794 = vmatpush.msra.mxu2 %v2301_v58 }
 0x2f7   : > { %1856 = vmatpush.msra.mxu3 %v2331_v32  ;;  %v1891_v32 = vld [vmem:[%s3645_s11 + $0x8] sm:$0xff] }
 0x2f8   : > { %1795 = vmatpush.msra.mxu2 %v2300_v61 }
 0x2f9   : > { %1857 = vmatpush.msra.mxu3 %v2330_v46 }
 0x2fb   : > { %1858 = vmatpush.msra.mxu3 %v2329_v49 }
 0x2fd   : > { %1859 = vmatpush.msra.mxu3 %v2328_v52 }
 0x2ff   : > { %1860 = vmatpush.msra.mxu3 %v2327_v55 }
 0x301   : > { %1861 = vmatpush.msra.mxu3 %v2326_v57 }
 0x303   : > { %1862 = vmatpush.msra.mxu3 %v2325_v0  ;;  %v1958_v0 = vld [vmem:[%s3647_s13 + $0x48] sm:$0xff] }
 0x305   : > { %1863 = vmatpush.msra.mxu3 %v2324_v1  ;;  %v1957_v1 = vld [vmem:[%s3647_s13 + $0x40] sm:$0xff] }
 0x307   : > { %1864 = vmatpush.msra.mxu3 %v2323_v4  ;;  %v1954_v4 = vld [vmem:[%s3647_s13 + $0x28] sm:$0xff] }
 0x309   : > { %1865 = vmatpush.msra.mxu3 %v2322_v6  ;;  %v1952_v6 = vld [vmem:[%s3647_s13 + $0x18] sm:$0xff] }
 0x360   : > { %v1590_v19 = vpop.f32.mrf.mxu2 }
 0x361   : > { %1652 = vmatmul.f32.vlgmr.msra.gmra.mxu0 %v1590_v19 }
 0x365   : > { %v1610_v11 = vpop.f32.mrf.mxu3 }
 0x366   : > { %2286 = vmatmul.msk.f32.vlgmr.msrb.gmra.mxu2 %vm505_vm0, %v1610_v11 }
 0x367   : > { %1911 = vmatpush.msrb.mxu2 %v1904_v28 }
 0x369   : > { %1912 = vmatpush.msrb.mxu2 %v1903_v20 }
 0x36b   : > { %1913 = vmatpush.msrb.mxu2 %v1902_v30  ;;  %v1960_v30 = vld [vmem:[%s3648_s14] sm:$0x1] }
 0x36d   : > { %1914 = vmatpush.msrb.mxu2 %v1901_v29 }
 0x36f   : > { %1915 = vmatpush.msrb.mxu2 %v1900_v31 }
 0x371   : > { %1916 = vmatpush.msrb.mxu2 %v1899_v33 }
 0x373   : > { %1917 = vmatpush.msrb.mxu2 %v1898_v34 }
 0x375   : > { %1918 = vmatpush.msrb.mxu2 %v1897_v14 }
 0x377   : > { %1919 = vmatpush.msrb.mxu2 %v1896_v27 }
 0x379   : > { %1920 = vmatpush.msrb.mxu2 %v1895_v37 }
 0x37b   : > { %1921 = vmatpush.msrb.mxu2 %v1894_v39 }
 0x37d   : > { %1922 = vmatpush.msrb.mxu2 %v1893_v41 }
 0x37f   : > { %1923 = vmatpush.msrb.mxu2 %v1892_v36 }
 0x381   : > { %1924 = vmatpush.msrb.mxu2 %v1891_v32 }
 0x383   : > { %1925 = vmatpush.msrb.mxu2 %v1890_v38 }
 0x3de   : > { %v1653_v56 = vpop.f32.mrf.mxu0 }
 0x3e9   : > { %v1673_v60 = vpop.f32.mrf.mxu2 }
 0x3ea   : > { %v1674_v63 = vadd.f32 %v1673_v60, %v1653_v56 }
 0x3ec   : > { %v2287_v3 = vmul.f32 -1.442695, %v1674_v63  ;;  %v1959_v63 = vld [vmem:[%s3647_s13 + $0x50] sm:$0xf] }
 0x3ed   : > { %2336 = vmatpush.msk.msrb.mxu0 %vm871_vm4, %v1959_v63 }
 0x3ee   : > { %2393 = vpow2.f32 %v2287_v3  ;;  %v1955_v3 = vld [vmem:[%s3647_s13 + $0x30] sm:$0xff] }
 0x3ef   : > { %1973 = vmatpush.msrb.mxu0 %v1958_v0 }
 0x3f1   : > { %1974 = vmatpush.msrb.mxu0 %v1957_v1 }
 0x3f3   : > { %1975 = vmatpush.msrb.mxu0 %v1956_v2 }
 0x3f4   : > { %v2394_v8 = vpop.eup %2393 }
 0x3f5   : > { %v1679_v10 = vadd.f32 1.0, %v2394_v8  ;;  %1976 = vmatpush.msrb.mxu0 %v1955_v3  ;;  %v1950_v8 = vld [vmem:[%s3647_s13 + $0x8] sm:$0xff] }
 0x3f7   : > { %2395 = vrcp.f32 %v1679_v10  ;;  %v1691_v16 = vand.u32 2147483648, %v1679_v10  ;;  %v1689_v18 = vand.u32 2147483647, %v1679_v10  ;;  %vm1685_vm3 = vweird.f32 %v1679_v10  ;;  %1977 = vmatpush.msrb.mxu0 %v1954_v4 }
 0x3f9   : > { %v1692_v11 = vor.u32 1.1754944e-38, %v1691_v16  ;;  %vm1690_vm7 = vcmp.eq.f32.partialorder %v1689_v18, 8.507059e+37  ;;  %1978 = vmatpush.msrb.mxu0 %v1953_v5 }
 0x3fb   : > { %1979 = vmatpush.msrb.mxu0 %v1952_v6 }
 0x3fd   : > { %v2396_v12 = vpop.eup %2395  ;;  %1980 = vmatpush.msrb.mxu0 %v1951_v7 }
 0x3fe   : > { %v1681_v15 = vmul.f32 %v2396_v12, %v1679_v10  ;;  %vm1686_vm0 = vweird.f32 %v2396_v12  ;;  %v1949_v10 = vld [vmem:[%s3647_s13] sm:$0xff] }
 0x3ff   : > { %vm1687_vm5 = vmor %vm1685_vm3, %vm1686_vm0  ;;  %1981 = vmatpush.msrb.mxu0 %v1950_v8  ;;  %vm2006_vm3 = vcmask 73728  }
 0x400   : > { %v1682_v13 = vsub.f32 1.0, %v1681_v15 }
 0x401   : > { %1982 = vmatpush.msrb.mxu0 %v1949_v10 }
 0x402   : > { %v1683_v17 = vmul.f32 %v2396_v12, %v1682_v13 }
 0x404   : > { %v1684_v19 = vadd.f32 %v2396_v12, %v1683_v17 }
 0x406   : > { %v1688_v21 = vsel %vm1687_vm5, %v2396_v12, %v1684_v19  ;;  %v1905_v12 = vld [vmem:[%s3646_s12] sm:$0x1] }
 0x407   : > { %v1693_v22 = vsel %vm1690_vm7, %v1692_v11, %v1688_v21 }
 0x408   : > { %v1742_v24 = vrot.slane %v1693_v22, 1  ;;  %2288 = vmatmul.msk.f32.vlgmr.msrb.gmra.mxu1 %vm1706_vm6, %v1693_v22  ;;  %v1777_v25 = vrot.slane %v1693_v22, 2  ;;  %v1812_v26 = vrot.slane %v1693_v22, 3  ;;  %v1847_v9 = vrot.slane %v1693_v22, 4 }
 0x40a   : > { %2299 = vmatmul.msk.f32.vlgmr.msrb.gmra.mxu3 %vm1706_vm6, %v1742_v24  ;;  %2310 = vmatmul.msk.f32.vlgmr.msra.gmra.mxu2 %vm1706_vm6, %v1777_v25 }
 0x410   : > { %2321 = vmatmul.msk.f32.vlgmr.msra.gmra.mxu1 %vm1706_vm6, %v1812_v26 }
 0x412   : > { %2332 = vmatmul.msk.f32.vlgmr.msra.gmra.mxu3 %vm1706_vm6, %v1847_v9 }
 0x485   : > { %v1727_v23 = vpop.f32.mrf.mxu1 }
 0x486   : > { %v1730_v40 = vadd.f32 %v1727_v23, %v1695_v35 }
 0x48d   : > { %v1762_v42 = vpop.f32.mrf.mxu3  ;;  %v1797_v44 = vpop.f32.mrf.mxu2 }
 0x48e   : > { %v1765_v43 = vadd.f32 %v1762_v42, %v1730_v40  ;;  %v1832_v46 = vpop.f32.mrf.mxu1 }
 0x490   : > { %v1800_v45 = vadd.f32 %v1797_v44, %v1765_v43 }
 0x492   : > { %v1835_v47 = vadd.f32 %v1832_v46, %v1800_v45 }
 0x495   : > { %v1867_v48 = vpop.f32.mrf.mxu3 }
 0x496   : > { %v1870_v49 = vadd.f32 %v1867_v48, %v1835_v47 }
 0x498   : > { %v2333_v50 = vmul.f32 -1.442695, %v1870_v49 }
 0x49a   : > { %2397 = vpow2.f32 %v2333_v50 }
 0x4a0   : > { %v2398_v51 = vpop.eup %2397 }
 0x4a1   : > { %v1874_v52 = vadd.f32 1.0, %v2398_v51 }
 0x4a3   : > { %2399 = vrcp.f32 %v1874_v52  ;;  %v1886_v56 = vand.u32 2147483648, %v1874_v52  ;;  %v1884_v58 = vand.u32 2147483647, %v1874_v52  ;;  %vm1880_vm9 = vweird.f32 %v1874_v52 }
 0x4a5   : > { %v1887_v60 = vor.u32 1.1754944e-38, %v1886_v56  ;;  %vm1885_vm13 = vcmp.eq.f32.partialorder %v1884_v58, 8.507059e+37 }
 0x4a9   : > { %v2400_v53 = vpop.eup %2399 }
 0x4aa   : > { %v1876_v54 = vmul.f32 %v2400_v53, %v1874_v52  ;;  %vm1881_vm8 = vweird.f32 %v2400_v53 }
 0x4ab   : > { %vm1882_vm11 = vmor %vm1880_vm9, %vm1881_vm8 }
 0x4ac   : > { %v1877_v55 = vsub.f32 1.0, %v1876_v54 }
 0x4ae   : > { %v1878_v57 = vmul.f32 %v2400_v53, %v1877_v55 }
 0x4b0   : > { %v1879_v59 = vadd.f32 %v2400_v53, %v1878_v57 }
 0x4b2   : > { %v1883_v61 = vsel %vm1882_vm11, %v2400_v53, %v1879_v59 }
 0x4b3   : > { %v1888_v62 = vsel %vm1885_vm13, %v1887_v60, %v1883_v61 }
 0x4b4   : > { %2334 = vmatmul.msk.f32.vlgmr.msrb.gmra.mxu2 %vm1906_vm12, %v1888_v62 }
 0x537   : > { %v1927_v15 = vpop.f32.mrf.mxu2 }
 0x538   : > { %v1928_v13 = vadd.f32 %v1927_v15, %v1905_v12 }
 0x53a   : > { %v2335_v16 = vmul.f32 -1.442695, %v1928_v13 }
 0x53c   : > { %2401 = vpow2.f32 %v2335_v16 }
 0x542   : > { %v2402_v17 = vpop.eup %2401 }
 0x543   : > { %v1933_v18 = vadd.f32 1.0, %v2402_v17 }
 0x545   : > { %2403 = vrcp.f32 %v1933_v18  ;;  %v1945_v22 = vand.u32 2147483648, %v1933_v18  ;;  %v1943_v25 = vand.u32 2147483647, %v1933_v18  ;;  %vm1939_vm14 = vweird.f32 %v1933_v18 }
 0x547   : > { %v1946_v9 = vor.u32 1.1754944e-38, %v1945_v22  ;;  %vm1944_vm1 = vcmp.eq.f32.partialorder %v1943_v25, 8.507059e+37 }
 0x54b   : > { %v2404_v19 = vpop.eup %2403 }
 0x54c   : > { %v1935_v11 = vmul.f32 %v2404_v19, %v1933_v18  ;;  %vm1940_vm4 = vweird.f32 %v2404_v19 }
 0x54d   : > { %vm1941_vm15 = vmor %vm1939_vm14, %vm1940_vm4 }
 0x54e   : > { %v1936_v21 = vsub.f32 1.0, %v1935_v11 }
 0x550   : > { %v1937_v24 = vmul.f32 %v2404_v19, %v1936_v21 }
 0x552   : > { %v1938_v26 = vadd.f32 %v2404_v19, %v1937_v24 }
 0x554   : > { %v1942_v28 = vsel %vm1941_vm15, %v2404_v19, %v1938_v26 }
 0x555   : > { %v1947_v20 = vsel %vm1944_vm1, %v1946_v9, %v1942_v28 }
 0x556   : > { %2337 = vmatmul.msk.f32.vlgmr.msrb.gmra.mxu0 %vm1149_vm10, %v1947_v20 }
 0x5d3   : > { %v1984_v29 = vpop.f32.mrf.mxu0 }
 0x5d4   : > { %v1985_v31 = vadd.f32 %v1984_v29, %v1960_v30 }
 0x5d6   : > { %v2338_v33 = vmul.f32 -1.442695, %v1985_v31 }
 0x5d8   : > { %2405 = vpow2.f32 %v2338_v33 }
 0x5de   : > { %v2406_v34 = vpop.eup %2405 }
 0x5df   : > { %v1990_v14 = vadd.f32 1.0, %v2406_v34 }
 0x5e1   : > { %2407 = vrcp.f32 %v1990_v14  ;;  %v2002_v37 = vand.u32 2147483648, %v1990_v14  ;;  %v2000_v40 = vand.u32 2147483647, %v1990_v14  ;;  %vm1996_vm2 = vweird.f32 %v1990_v14 }
 0x5e3   : > { %v2003_v42 = vor.u32 1.1754944e-38, %v2002_v37  ;;  %vm2001_vm5 = vcmp.eq.f32.partialorder %v2000_v40, 8.507059e+37 }
 0x5e7   : > { %v2408_v27 = vpop.eup %2407 }
 0x5e8   : > { %v1992_v35 = vmul.f32 %v2408_v27, %v1990_v14  ;;  %vm1997_vm10 = vweird.f32 %v2408_v27 }
 0x5e9   : > { %vm1998_vm0 = vmor %vm1996_vm2, %vm1997_vm10 }
 0x5ea   : > { %v1993_v23 = vsub.f32 1.0, %v1992_v35 }
 0x5ec   : > { %v1994_v39 = vmul.f32 %v2408_v27, %v1993_v23 }
 0x5ee   : > { %v1995_v41 = vadd.f32 %v2408_v27, %v1994_v39 }
 0x5f0   : > { %v1999_v36 = vsel %vm1998_vm0, %v2408_v27, %v1995_v41 }
 0x5f1   : > { %v2004_v43 = vsel %vm2001_vm5, %v2003_v42, %v1999_v36 }
 0x5f2   : > { %2007 = vst.msk [vmem:[%s486_s23] sm:$0x1] %vm2006_vm3, %v2004_v43 }
 0x5f3   : > { %2436 = shalt.err (!%p2433_p3)
}
 0x5f4   : > { %2346 = dma.vmem_to_hbm [thread:$0]  (%p2591_p5), %s2020_s25, 16, %s2022_s18, %s2009_s22  }
 0x5f5 PF: > { %s3670_s21 = sld [smem:[#allocation7_spill]] }
 0x5f6   : > { %s3671_s17 = sld [smem:[#allocation5_spill]] }
 0x5fb   : > { %p2352_p4 = scmp.ge.s32.totalorder %s3670_s21, 2 }
 0x5fc   : > { %s2033_s0 = sand.u32 1, %s3671_s17  }
 0x5fd   : > { %p2349_p7 = pnand %p2352_p4, %p2595_p6  ;;  %s2034_s29 = scalar_lea.sflag [#allocation3], %s2033_s0 }
 0x5ff   : > { %p2350_p8 = pneg %p2349_p7 }
 0x601   : > { %2454 = dma.done.wait (%p2350_p8), %s2034_s29, 16  }
 0x602   : > { %2456 = vsyncadd (%p2350_p8), %s2034_s29, 4294967280  ;;  %s3673_s21 = sld [smem:[#allocation8_spill]]  ;;  %s3676_s18 = smov %s2463_s19 }
 0x603   : > { %s3674_s20 = sld [smem:[#allocation6_spill]] }
 0x604   : > { %s3675_s24 = sld [smem:[#allocation9_spill]] }
 0x608   : > { %p25_p9 = scmp.ge.s32.totalorder %s3673_s21, 4  }
 0x609   : > { %s3677_s19 = smov %s3674_s20 }
 0x60a   : > { %s3678_s20 = smov %s3675_s24  ;;  %27 = sbr.rel (!%p25_p9) target bundleno = 5 (0x5), region = 127 }
 0x60f   :  { %2039 = vsyncpa [#allocation3], 1 }
 0x610   :  { %2041 = vsyncpa [#allocation3 + $0x1], 1 }

</bundles_post_ra>
